<compile_context>
chip_gen: v5e
topology: v5e:2x2
jax: 0.10.0
libtpu: 0.0.40
codegen_flags: <defaults>
</compile_context>

<pallas_src>
import functools

import jax
import jax.numpy as jnp
from jax import lax
from jax.experimental import pallas as pl
from jax.experimental.pallas import tpu as pltpu


# ----------------------------------------------------------------------------
# helpers
# ----------------------------------------------------------------------------
def _gelu(x):
    # tanh approximation of GELU (BERT-style), computed in f32
    # TODO(synk): HF BERT/Electra default to exact erf GELU; minor numeric drift.
    c = 0.7978845608028654  # sqrt(2/pi)
    return 0.5 * x * (1.0 + jnp.tanh(c * (x + 0.044715 * x * x * x)))


def _layernorm(x, g, b, eps=1e-12):
    mu = jnp.mean(x, axis=-1, keepdims=True)
    var = jnp.mean((x - mu) ** 2, axis=-1, keepdims=True)
    return (x - mu) * lax.rsqrt(var + eps) * g + b


def _num_tensorcores():
    """v7x has 2 TensorCores per chip; v5e/v6e have 1 (default when unknown)."""
    try:
        kind = jax.devices()[0].device_kind.lower()
        if "v7" in kind:
            return 2
    except Exception:
        pass
    return 1


# ----------------------------------------------------------------------------
# Fused transformer-encoder stack kernel
# grid = (num_seq_blocks, num_layers); the activation block is resident in a
# persistent VMEM scratch across the (arbitrary) layer axis, weights stream per
# layer, and only the pooled CLS row is written back to HBM at the last layer.
# ----------------------------------------------------------------------------
def encoder_stack_kernel(x_ref, wqkv_ref, bqkv_ref, wo_ref, bo_ref,
                         ln1g_ref, ln1b_ref, w1_ref, b1_ref, w2_ref, b2_ref,
                         ln2g_ref, ln2b_ref, o_ref, act_ref, *, nheads, pool_idx):
    layer = pl.program_id(1)
    last_layer = pl.num_programs(1) - 1

    @pl.when(layer == 0)
    def _():                                  # seed the resident activation scratch
        act_ref[...] = x_ref[...]

    Nb, S, H = act_ref.shape
    R = Nb * S
    dh = H // nheads
    scale = 1.0 / (dh ** 0.5)

    x = act_ref[...].reshape(R, H)                                 # f32 activations
    xb = x.astype(jnp.bfloat16)

    # fused QKV projection: one (R,H)x(H,3H) bf16 MXU matmul, f32 accumulation
    qkv = jnp.dot(xb, wqkv_ref[0], preferred_element_type=jnp.float32) + bqkv_ref[0]
    q = qkv[:, 0:H].reshape(Nb, S, H).astype(jnp.bfloat16)
    k = qkv[:, H:2 * H].reshape(Nb, S, H).astype(jnp.bfloat16)
    v = qkv[:, 2 * H:3 * H].reshape(Nb, S, H).astype(jnp.bfloat16)

    # Per-head attention, batched over the Nb sequences in this block.  The
    # per-head contexts are concatenated into one lane-dense (R, H) buffer and
    # head recombination happens in ONE full-width (R,H)@(H,H) MXU matmul (full
    # MXU depth, no nheads K=dh matmuls / f32 accumulator adds).
    # TODO(synk): no attention/padding mask (real CoMPM encoders use attention_mask).
    # TODO(synk): at real head counts (nheads=12) fold heads into the batch dim of a
    # single batched einsum instead of this small static Python head loop.
    ctx_heads = []
    for h in range(nheads):                                        # static, small
        sl = slice(h * dh, (h + 1) * dh)
        qs, ks, vs = q[:, :, sl], k[:, :, sl], v[:, :, sl]         # (Nb, S, dh)
        s = jnp.einsum('bqd,bkd->bqk', qs, ks,
                       preferred_element_type=jnp.float32) * scale  # (Nb, S, S)
        s = s - jnp.max(s, axis=-1, keepdims=True)
        p = jnp.exp(s)
        # approx reciprocal (EUP slot, ~free); ~1e-3 rel. deviation from exact softmax
        p = p * pl.reciprocal(jnp.sum(p, axis=-1, keepdims=True), approx=True)
        ctx_heads.append(jnp.einsum('bqk,bkd->bqd', p.astype(jnp.bfloat16), vs,
                                    preferred_element_type=jnp.float32))
    ctx = jnp.concatenate(ctx_heads, axis=-1).reshape(R, H)        # (R, H) lane-dense
    attn = jnp.dot(ctx.astype(jnp.bfloat16), wo_ref[0],
                   preferred_element_type=jnp.float32) + bo_ref[0]

    h1 = _layernorm(x + attn, ln1g_ref[0], ln1b_ref[0])
    ff = _gelu(jnp.dot(h1.astype(jnp.bfloat16), w1_ref[0],
                       preferred_element_type=jnp.float32) + b1_ref[0])
    ff = jnp.dot(ff.astype(jnp.bfloat16), w2_ref[0],
                 preferred_element_type=jnp.float32) + b2_ref[0]
    out = _layernorm(h1 + ff, ln2g_ref[0], ln2b_ref[0]).reshape(Nb, S, H)

    @pl.when(layer < last_layer)
    def _():                                  # keep activations resident for next layer
        act_ref[...] = out

    @pl.when(layer == last_layer)
    def _():                                  # emit only the pooled CLS rows (lane-dense)
        o_ref[...] = out[:, pool_idx:pool_idx + 1, :]


def run_encoder(tokens, p, nheads, last=False):
    """tokens: (N, S) int32 -> pooled hidden state (N, H) f32 (CLS or last token)."""
    x = embed(tokens, p)                                           # (N, S, H) f32
    N, S, H = x.shape
    L = p['wqkv'].shape[0]
    pool_idx = S - 1 if last else 0
    # Split the sequence axis across TensorCores only when the chip has more than
    # one (v7x); on 1-TC chips nb>1 would just re-stream the per-layer weight
    # stack for zero parallelism.
    ncores = _num_tensorcores()
    nb = ncores if (ncores > 1 and N % ncores == 0 and N >= ncores) else 1
    Nb = N // nb
    weights = [p['wqkv'], p['bqkv'], p['wo'], p['bo'], p['ln1g'], p['ln1b'],
               p['w1'], p['b1'], p['w2'], p['b2'], p['ln2g'], p['ln2b']]
    w_specs = [pl.BlockSpec((1,) + w.shape[1:], lambda i, l: (l, 0, 0))
               for w in weights]
    # TODO(synk): at real BERT sizes (H=768, F=3072) row-tile inside the layer
    # (inner pltpu.emit_pipeline) / tile w1,w2 over F, and mark the x input with
    # pipeline_mode=pl.Buffered(1) (read only at layer==0) to fit v7x's 64 MiB VMEM.
    out = pl.pallas_call(
        functools.partial(encoder_stack_kernel, nheads=nheads, pool_idx=pool_idx),
        out_shape=jax.ShapeDtypeStruct((N, 1, H), jnp.float32),
        grid_spec=pltpu.PrefetchScalarGridSpec(
            num_scalar_prefetch=0,
            grid=(nb, L),
            in_specs=[pl.BlockSpec((Nb, S, H), lambda i, l: (i, 0, 0))] + w_specs,
            out_specs=pl.BlockSpec((Nb, 1, H), lambda i, l: (i, 0, 0)),
            scratch_shapes=[pltpu.VMEM((Nb, S, H), jnp.float32)]),
        compiler_params=pltpu.CompilerParams(
            dimension_semantics=("parallel", "arbitrary"),
            vmem_limit_bytes=64 * 1024 * 1024),
    )(x, *weights)
    return out.reshape(N, H)


# ----------------------------------------------------------------------------
# Fused 2-layer speaker GRU (PyTorch gate order r,z,n; h0 = zeros) + classifier.
# Whole batch per invocation; layer-0 input projection hoisted; [wih1 | whh0]
# fused into one (H, 6H) weight so each step issues 2 matmuls on the serial
# recurrence instead of 3; time loop fully unrolled; final (ctx + spk) @ W
# classifier fused into the output write.
# ----------------------------------------------------------------------------
def gru2_classifier_kernel(spk_ref, ctx_ref, wih0_ref, bih0_ref,
                           wcomb_ref, bih1_ref, bhh0_ref, whh1_ref, bhh1_ref,
                           wcls_ref, bcls_ref, o_ref):
    B, H = ctx_ref.shape
    T = spk_ref.shape[0] // B
    H3 = 3 * H

    def gru_cell(gi, gh, h):
        r = jax.nn.sigmoid(gi[:, 0:H] + gh[:, 0:H])
        z = jax.nn.sigmoid(gi[:, H:2 * H] + gh[:, H:2 * H])
        n = jnp.tanh(gi[:, 2 * H:3 * H] + r * gh[:, 2 * H:3 * H])
        return (1.0 - z) * n + z * h

    # Hoisted layer-0 input projection: one (T*B, 3H) matmul instead of T matvecs
    # on the serial recurrence.  spk_ref is time-major: rows [t*B:(t+1)*B] = step t.
    gi0_all = jnp.dot(spk_ref[...].astype(jnp.bfloat16), wih0_ref[...],
                      preferred_element_type=jnp.float32) + bih0_ref[...]

    h1 = jnp.zeros((B, H), jnp.float32)
    h2 = jnp.zeros((B, H), jnp.float32)
    # h1 == 0 initially -> gh1 = 0 @ whh0 + bhh0 = bhh0
    gh1 = jnp.broadcast_to(bhh0_ref[...], (B, H3))
    # T is small & static -> fully unrolled recurrence (visible to the scheduler).
    for t in range(T):
        h1 = gru_cell(gi0_all[t * B:(t + 1) * B, :], gh1, h1)
        # fused [wih1 | whh0]: gi1 for layer 2 (this step) and gh1 for layer 1
        # (next step) share the same h1 -> one (B,H)@(H,6H) matmul.
        comb = jnp.dot(h1.astype(jnp.bfloat16), wcomb_ref[...],
                       preferred_element_type=jnp.float32)
        gi1 = comb[:, 0:H3] + bih1_ref[...]
        gh1 = comb[:, H3:2 * H3] + bhh0_ref[...]
        # TODO(synk): nn.GRU(dropout=0.3) between layers is train-only; omitted (eval).
        gh2 = jnp.dot(h2.astype(jnp.bfloat16), whh1_ref[...],
                      preferred_element_type=jnp.float32) + bhh1_ref[...]
        h2 = gru_cell(gi1, gh2, h2)

    # attention == 'none': final = context + speaker; logits = W(final) + b.
    # Classifier output is padded to a 128-lane boundary (sliced in the wrapper).
    final = (ctx_ref[...] + h2).astype(jnp.bfloat16)
    o_ref[...] = jnp.dot(final, wcls_ref[...],
                         preferred_element_type=jnp.float32) + bcls_ref[...]


def speaker_gru_classify(spk_tm, ctx, gru_p, cls_w_pad, cls_b_pad):
    """spk_tm: (T*B, H) time-major speaker CLS vectors -> padded logits (B, Cpad)."""
    B, _ = ctx.shape
    Cp = cls_w_pad.shape[1]
    # fuse [wih1 | whh0] along the output axis (bf16, lane-aligned gate blocks)
    wcomb = jnp.concatenate([gru_p['wih1'], gru_p['whh0']], axis=1)   # (H, 6H)
    args = [spk_tm, ctx,
            gru_p['wih0'], gru_p['bih0'],
            wcomb, gru_p['bih1'], gru_p['bhh0'],
            gru_p['whh1'], gru_p['bhh1'],
            cls_w_pad, cls_b_pad]
    in_specs = [pl.BlockSpec(a.shape, lambda i, nd=a.ndim: (0,) * nd) for a in args]
    # TODO(synk): grid=(1,) leaves the second v7x TensorCore idle; split B across a
    # 2-wide parallel axis once B is large enough to matter.
    return pl.pallas_call(
        gru2_classifier_kernel,
        out_shape=jax.ShapeDtypeStruct((B, Cp), jnp.float32),
        grid_spec=pltpu.PrefetchScalarGridSpec(
            num_scalar_prefetch=0,
            grid=(1,),
            in_specs=in_specs,
            out_specs=pl.BlockSpec((B, Cp), lambda i: (0, 0))),
        compiler_params=pltpu.CompilerParams(dimension_semantics=("arbitrary",)),
    )(*args)


# ----------------------------------------------------------------------------
# Plain-JAX glue: embeddings, parameter init, forward pass
# ----------------------------------------------------------------------------
def embed(tokens, p):
    x = p['word_emb'][tokens] + p['pos_emb'][None, :tokens.shape[1], :]
    mu = jnp.mean(x, -1, keepdims=True)
    var = jnp.mean((x - mu) ** 2, -1, keepdims=True)
    return ((x - mu) * lax.rsqrt(var + 1e-12)
            * p['emb_ln_g'][None] + p['emb_ln_b'][None]).astype(jnp.float32)


def init_encoder_params(key, vocab, max_len, H, F, nlayers):
    def nrm(k, shape, s=0.02):
        return jax.random.normal(k, shape, jnp.float32) * s
    bf16 = jnp.bfloat16
    k_emb, k_pos, k_lay = jax.random.split(key, 3)
    lkeys = jax.random.split(k_lay, nlayers)
    wqkv, wo, w1, w2 = [], [], [], []
    for li in range(nlayers):
        ks = jax.random.split(lkeys[li], 4)
        wqkv.append(nrm(ks[0], (H, 3 * H)))
        wo.append(nrm(ks[1], (H, H)))
        w1.append(nrm(ks[2], (H, F)))
        w2.append(nrm(ks[3], (F, H)))
    L = nlayers
    return {
        'word_emb': nrm(k_emb, (vocab, H)),
        'pos_emb': nrm(k_pos, (max_len, H)),
        'emb_ln_g': jnp.ones((1, H), jnp.float32),
        'emb_ln_b': jnp.zeros((1, H), jnp.float32),
        # per-layer weights stacked on a leading layer axis; matmul operands bf16,
        # biases / LayerNorm params f32.
        'wqkv': jnp.stack(wqkv).astype(bf16),            # (L, H, 3H)
        'bqkv': jnp.zeros((L, 1, 3 * H), jnp.float32),
        'wo': jnp.stack(wo).astype(bf16),                # (L, H, H)
        'bo': jnp.zeros((L, 1, H), jnp.float32),
        'ln1g': jnp.ones((L, 1, H), jnp.float32),
        'ln1b': jnp.zeros((L, 1, H), jnp.float32),
        'w1': jnp.stack(w1).astype(bf16),                # (L, H, F)
        'b1': jnp.zeros((L, 1, F), jnp.float32),
        'w2': jnp.stack(w2).astype(bf16),                # (L, F, H)
        'b2': jnp.zeros((L, 1, H), jnp.float32),
        'ln2g': jnp.ones((L, 1, H), jnp.float32),
        'ln2b': jnp.zeros((L, 1, H), jnp.float32),
    }


def init_gru_params(key, H):
    def nrm(k, shape, s=0.02):
        return jax.random.normal(k, shape, jnp.float32) * s
    bf16 = jnp.bfloat16
    k0, k1, k2, k3 = jax.random.split(key, 4)
    # PyTorch GRU weights stored pre-transposed as (H, 3H), gate order (r, z, n);
    # with H a multiple of 128 every gate block is lane-aligned.
    return {
        'wih0': nrm(k0, (H, 3 * H)).astype(bf16), 'whh0': nrm(k1, (H, 3 * H)).astype(bf16),
        'bih0': jnp.zeros((1, 3 * H), jnp.float32), 'bhh0': jnp.zeros((1, 3 * H), jnp.float32),
        'wih1': nrm(k2, (H, 3 * H)).astype(bf16), 'whh1': nrm(k3, (H, 3 * H)).astype(bf16),
        'bih1': jnp.zeros((1, 3 * H), jnp.float32), 'bhh1': jnp.zeros((1, 3 * H), jnp.float32),
    }


def compm_forward(batch_input_tokens, batch_speaker_tokens,
                  ctx_p, spk_p, gru_p, cls_w, cls_b, *, nheads, last=False):
    # context_model(batch_input_tokens).last_hidden_state[:, 0/-1, :]
    # (pooled CLS rows are produced directly by the encoder kernel)
    batch_context_output = run_encoder(batch_input_tokens, ctx_p, nheads, last)  # (B, H)

    # speaker_model over every speaker utterance (one flattened encoder call)
    B, T, S = batch_speaker_tokens.shape
    # TODO(synk): the empty-speaker branch (speaker_tokens.shape[0]==0 -> zeros)
    # is not modelled; a fixed T>0 utterances per batch element is assumed.
    spk_cls = run_encoder(batch_speaker_tokens.reshape(B * T, S), spk_p, nheads,
                          last).reshape(B, T, -1)                                 # (B, T, H)
    H = spk_cls.shape[-1]
    spk_tm = jnp.transpose(spk_cls, (1, 0, 2)).reshape(T * B, H)                  # time-major

    # pad the classifier to a 128-lane output so the final store is lane-dense
    C = cls_w.shape[1]
    Cp = ((C + 127) // 128) * 128
    cls_w_pad = jnp.zeros((H, Cp), jnp.bfloat16).at[:, :C].set(cls_w.astype(jnp.bfloat16))
    cls_b_pad = jnp.zeros((1, Cp), jnp.float32).at[:, :C].set(cls_b.astype(jnp.float32))

    # TODO(synk): 'dot'/'cross'/'add' attention variants not implemented (attention='none').
    logits_pad = speaker_gru_classify(spk_tm, batch_context_output, gru_p,
                                      cls_w_pad, cls_b_pad)                       # (B, Cp)
    return logits_pad[:, :C]


# ----------------------------------------------------------------------------
if __name__ == "__main__":
    B, SEQ, T = 2, 8, 3          # batch, token length, speaker utterances per item
    H, F = 128, 256              # hidden size (lane-dense multiple of 128), FFN size
    NHEADS, NLAYERS = 2, 2
    VOCAB, CLS_NUM = 100, 7

    root = jax.random.PRNGKey(0)
    k_tok, k_spk_tok, k_ctx, k_spk, k_gru, k_w = jax.random.split(root, 6)

    batch_input_tokens = jax.random.randint(k_tok, (B, SEQ), 0, VOCAB, dtype=jnp.int32)
    batch_speaker_tokens = jax.random.randint(k_spk_tok, (B, T, SEQ), 0, VOCAB,
                                              dtype=jnp.int32)

    ctx_params = init_encoder_params(k_ctx, VOCAB, SEQ, H, F, NLAYERS)
    spk_params = init_encoder_params(k_spk, VOCAB, SEQ, H, F, NLAYERS)
    gru_params = init_gru_params(k_gru, H)
    cls_w = jax.random.normal(k_w, (H, CLS_NUM), jnp.float32) * 0.02
    cls_b = jnp.zeros((1, CLS_NUM), jnp.float32)

    logits = compm_forward(batch_input_tokens, batch_speaker_tokens,
                           ctx_params, spk_params, gru_params, cls_w, cls_b,
                           nheads=NHEADS, last=False)
    logits = jax.block_until_ready(logits)

    assert logits.shape == (B, CLS_NUM), logits.shape
    assert bool(jnp.all(jnp.isfinite(logits)))
    print("KERNEL_OK")
</pallas_src>

<mosaic_0001>
module attributes {stable_mosaic.version = 11 : i64} {
  func.func @encoder_stack_kernel(%arg0: i32, %arg1: i32, %arg2: memref<2x8x128xf32, #tpu.memory_space<vmem>>, %arg3: memref<1x128x384xbf16, #tpu.memory_space<vmem>>, %arg4: memref<1x1x384xf32, #tpu.memory_space<vmem>>, %arg5: memref<1x128x128xbf16, #tpu.memory_space<vmem>>, %arg6: memref<1x1x128xf32, #tpu.memory_space<vmem>>, %arg7: memref<1x1x128xf32, #tpu.memory_space<vmem>>, %arg8: memref<1x1x128xf32, #tpu.memory_space<vmem>>, %arg9: memref<1x128x256xbf16, #tpu.memory_space<vmem>>, %arg10: memref<1x1x256xf32, #tpu.memory_space<vmem>>, %arg11: memref<1x256x128xbf16, #tpu.memory_space<vmem>>, %arg12: memref<1x1x128xf32, #tpu.memory_space<vmem>>, %arg13: memref<1x1x128xf32, #tpu.memory_space<vmem>>, %arg14: memref<1x1x128xf32, #tpu.memory_space<vmem>>, %arg15: memref<2x1x128xf32, #tpu.memory_space<vmem>>, %arg16: memref<2x8x128xf32, #tpu.memory_space<vmem>>) attributes {dimension_semantics = [#tpu.dimension_semantics<parallel>, #tpu.dimension_semantics<arbitrary>], iteration_bounds = array<i64: 1, 2>, scalar_prefetch = 0 : i64, scratch_operands = 1 : i64, tpu.core_type = #tpu.core_type<tc>, window_params = [{transform_indices = @transform_0, window_bounds = array<i64: 2, 8, 128>}, {transform_indices = @transform_1, window_bounds = array<i64: 1, 128, 384>}, {transform_indices = @transform_2, window_bounds = array<i64: 1, 1, 384>}, {transform_indices = @transform_3, window_bounds = array<i64: 1, 128, 128>}, {transform_indices = @transform_4, window_bounds = array<i64: 1, 1, 128>}, {transform_indices = @transform_5, window_bounds = array<i64: 1, 1, 128>}, {transform_indices = @transform_6, window_bounds = array<i64: 1, 1, 128>}, {transform_indices = @transform_7, window_bounds = array<i64: 1, 128, 256>}, {transform_indices = @transform_8, window_bounds = array<i64: 1, 1, 256>}, {transform_indices = @transform_9, window_bounds = array<i64: 1, 256, 128>}, {transform_indices = @transform_10, window_bounds = array<i64: 1, 1, 128>}, {transform_indices = @transform_11, window_bounds = array<i64: 1, 1, 128>}, {transform_indices = @transform_12, window_bounds = array<i64: 1, 1, 128>}, {transform_indices = @transform_13, window_bounds = array<i64: 2, 1, 128>}]} {
    %c0_i32 = arith.constant 0 : i32
    %0 = arith.cmpi eq, %arg1, %c0_i32 : i32
    %1 = arith.extui %0 : i1 to i32
    %c0_i32_0 = arith.constant 0 : i32
    %2 = arith.cmpi ne, %1, %c0_i32_0 : i32
    scf.if %2 {
      %c0_69 = arith.constant 0 : index
      %c0_70 = arith.constant 0 : index
      %c0_71 = arith.constant 0 : index
      %158 = vector.load %arg2[%c0_69, %c0_70, %c0_71] : memref<2x8x128xf32, #tpu.memory_space<vmem>>, vector<2x8x128xf32>
      %c0_72 = arith.constant 0 : index
      %c0_73 = arith.constant 0 : index
      %c0_74 = arith.constant 0 : index
      %159 = vector.load %arg16[%c0_72, %c0_73, %c0_74] : memref<2x8x128xf32, #tpu.memory_space<vmem>>, vector<2x8x128xf32>
      tpu.vector_store %arg16[%c0_72, %c0_73, %c0_74], %158 {strides = array<i32>} : memref<2x8x128xf32, #tpu.memory_space<vmem>>, vector<2x8x128xf32>,
    } else {
    }
    %c0 = arith.constant 0 : index
    %c0_1 = arith.constant 0 : index
    %c0_2 = arith.constant 0 : index
    %3 = vector.load %arg16[%c0, %c0_1, %c0_2] : memref<2x8x128xf32, #tpu.memory_space<vmem>>, vector<2x8x128xf32>
    %4 = vector.shape_cast %3 : vector<2x8x128xf32> to vector<16x128xf32>
    %5 = arith.truncf %4 : vector<16x128xf32> to vector<16x128xbf16>
    %c0_3 = arith.constant 0 : index
    %c0_4 = arith.constant 0 : index
    %c0_5 = arith.constant 0 : index
    %6 = vector.load %arg3[%c0_3, %c0_4, %c0_5] : memref<1x128x384xbf16, #tpu.memory_space<vmem>>, vector<1x128x384xbf16>
    %7 = vector.shape_cast %6 : vector<1x128x384xbf16> to vector<128x384xbf16>
    %cst = arith.constant dense<0.000000e+00> : vector<16x384xf32>
    %8 = tpu.matmul %5, %7, %cst {dimension_numbers = #tpu.dot_dimension_numbers<[1], [0], [0], [1], [0, 0, 1, 1], [], []>} : vector<16x128xbf16>, vector<128x384xbf16>, vector<16x384xf32> -> vector<16x384xf32>
    %c0_6 = arith.constant 0 : index
    %c0_7 = arith.constant 0 : index
    %c0_8 = arith.constant 0 : index
    %9 = vector.load %arg4[%c0_6, %c0_7, %c0_8] : memref<1x1x384xf32, #tpu.memory_space<vmem>>, vector<1x1x384xf32>
    %10 = vector.shape_cast %9 : vector<1x1x384xf32> to vector<1x384xf32>
    %11 = vector.broadcast %10 : vector<1x384xf32> to vector<16x384xf32>
    %12 = arith.addf %8, %11 : vector<16x384xf32>
    %13 = vector.extract_strided_slice %12 {offsets = [0, 0], sizes = [16, 128], strides = [1, 1]} : vector<16x384xf32> to vector<16x128xf32>
    %14 = vector.shape_cast %13 : vector<16x128xf32> to vector<2x8x128xf32>
    %15 = arith.truncf %14 : vector<2x8x128xf32> to vector<2x8x128xbf16>
    %16 = vector.extract_strided_slice %12 {offsets = [0, 128], sizes = [16, 128], strides = [1, 1]} : vector<16x384xf32> to vector<16x128xf32>
    %17 = vector.shape_cast %16 : vector<16x128xf32> to vector<2x8x128xf32>
    %18 = arith.truncf %17 : vector<2x8x128xf32> to vector<2x8x128xbf16>
    %19 = vector.extract_strided_slice %12 {offsets = [0, 256], sizes = [16, 128], strides = [1, 1]} : vector<16x384xf32> to vector<16x128xf32>
    %20 = vector.shape_cast %19 : vector<16x128xf32> to vector<2x8x128xf32>
    %21 = arith.truncf %20 : vector<2x8x128xf32> to vector<2x8x128xbf16>
    %22 = vector.extract_strided_slice %15 {offsets = [0, 0, 0], sizes = [2, 8, 64], strides = [1, 1, 1]} : vector<2x8x128xbf16> to vector<2x8x64xbf16>
    %23 = vector.extract_strided_slice %18 {offsets = [0, 0, 0], sizes = [2, 8, 64], strides = [1, 1, 1]} : vector<2x8x128xbf16> to vector<2x8x64xbf16>
    %24 = vector.extract_strided_slice %21 {offsets = [0, 0, 0], sizes = [2, 8, 64], strides = [1, 1, 1]} : vector<2x8x128xbf16> to vector<2x8x64xbf16>
    "tpu.trace_start"() <{level = 10 : i32, message = "bqd,bkd->bqk"}> : () -> ()
    %cst_9 = arith.constant dense<0.000000e+00> : vector<2x8x8xf32>
    %25 = tpu.matmul %22, %23, %cst_9 {dimension_numbers = #tpu.dot_dimension_numbers<[2], [2], [1], [1], [0, 0, 0, 1, 1, 1], [0], [0]>} : vector<2x8x64xbf16>, vector<2x8x64xbf16>, vector<2x8x8xf32> -> vector<2x8x8xf32>
    "tpu.trace_stop"() : () -> ()
    %cst_10 = arith.constant 1.250000e-01 : f32
    %26 = vector.broadcast %cst_10 : f32 to vector<2x8x8xf32>
    %27 = arith.mulf %25, %26 : vector<2x8x8xf32>
    %cst_11 = arith.constant dense<0xFF800000> : vector<2x8xf32>
    %28 = vector.multi_reduction <maximumf>, %27, %cst_11 [2] : vector<2x8x8xf32> to vector<2x8xf32>
    %29 = vector.shape_cast %28 : vector<2x8xf32> to vector<2x8x1xf32>
    %30 = vector.broadcast %29 : vector<2x8x1xf32> to vector<2x8x8xf32>
    %31 = arith.subf %27, %30 : vector<2x8x8xf32>
    %32 = math.exp %31 : vector<2x8x8xf32>
    %cst_12 = arith.constant dense<0.000000e+00> : vector<2x8xf32>
    %33 = vector.multi_reduction <add>, %32, %cst_12 [2] : vector<2x8x8xf32> to vector<2x8xf32>
    %34 = vector.shape_cast %33 : vector<2x8xf32> to vector<2x8x1xf32>
    %35 = tpu.reciprocal %34 {approx = true} : vector<2x8x1xf32> -> vector<2x8x1xf32>
    %36 = vector.broadcast %35 : vector<2x8x1xf32> to vector<2x8x8xf32>
    %37 = arith.mulf %32, %36 : vector<2x8x8xf32>
    %38 = arith.truncf %37 : vector<2x8x8xf32> to vector<2x8x8xbf16>
    "tpu.trace_start"() <{level = 10 : i32, message = "bqk,bkd->bqd"}> : () -> ()
    %cst_13 = arith.constant dense<0.000000e+00> : vector<2x8x64xf32>
    %39 = tpu.matmul %38, %24, %cst_13 {dimension_numbers = #tpu.dot_dimension_numbers<[2], [1], [1], [2], [0, 0, 0, 1, 1, 2], [0], [0]>} : vector<2x8x8xbf16>, vector<2x8x64xbf16>, vector<2x8x64xf32> -> vector<2x8x64xf32>
    "tpu.trace_stop"() : () -> ()
    %40 = vector.extract_strided_slice %15 {offsets = [0, 0, 64], sizes = [2, 8, 64], strides = [1, 1, 1]} : vector<2x8x128xbf16> to vector<2x8x64xbf16>
    %41 = vector.extract_strided_slice %18 {offsets = [0, 0, 64], sizes = [2, 8, 64], strides = [1, 1, 1]} : vector<2x8x128xbf16> to vector<2x8x64xbf16>
    %42 = vector.extract_strided_slice %21 {offsets = [0, 0, 64], sizes = [2, 8, 64], strides = [1, 1, 1]} : vector<2x8x128xbf16> to vector<2x8x64xbf16>
    "tpu.trace_start"() <{level = 10 : i32, message = "bqd,bkd->bqk"}> : () -> ()
    %cst_14 = arith.constant dense<0.000000e+00> : vector<2x8x8xf32>
    %43 = tpu.matmul %40, %41, %cst_14 {dimension_numbers = #tpu.dot_dimension_numbers<[2], [2], [1], [1], [0, 0, 0, 1, 1, 1], [0], [0]>} : vector<2x8x64xbf16>, vector<2x8x64xbf16>, vector<2x8x8xf32> -> vector<2x8x8xf32>
    "tpu.trace_stop"() : () -> ()
    %cst_15 = arith.constant 1.250000e-01 : f32
    %44 = vector.broadcast %cst_15 : f32 to vector<2x8x8xf32>
    %45 = arith.mulf %43, %44 : vector<2x8x8xf32>
    %cst_16 = arith.constant dense<0xFF800000> : vector<2x8xf32>
    %46 = vector.multi_reduction <maximumf>, %45, %cst_16 [2] : vector<2x8x8xf32> to vector<2x8xf32>
    %47 = vector.shape_cast %46 : vector<2x8xf32> to vector<2x8x1xf32>
    %48 = vector.broadcast %47 : vector<2x8x1xf32> to vector<2x8x8xf32>
    %49 = arith.subf %45, %48 : vector<2x8x8xf32>
    %50 = math.exp %49 : vector<2x8x8xf32>
    %cst_17 = arith.constant dense<0.000000e+00> : vector<2x8xf32>
    %51 = vector.multi_reduction <add>, %50, %cst_17 [2] : vector<2x8x8xf32> to vector<2x8xf32>
    %52 = vector.shape_cast %51 : vector<2x8xf32> to vector<2x8x1xf32>
    %53 = tpu.reciprocal %52 {approx = true} : vector<2x8x1xf32> -> vector<2x8x1xf32>
    %54 = vector.broadcast %53 : vector<2x8x1xf32> to vector<2x8x8xf32>
    %55 = arith.mulf %50, %54 : vector<2x8x8xf32>
    %56 = arith.truncf %55 : vector<2x8x8xf32> to vector<2x8x8xbf16>
    "tpu.trace_start"() <{level = 10 : i32, message = "bqk,bkd->bqd"}> : () -> ()
    %cst_18 = arith.constant dense<0.000000e+00> : vector<2x8x64xf32>
    %57 = tpu.matmul %56, %42, %cst_18 {dimension_numbers = #tpu.dot_dimension_numbers<[2], [1], [1], [2], [0, 0, 0, 1, 1, 2], [0], [0]>} : vector<2x8x8xbf16>, vector<2x8x64xbf16>, vector<2x8x64xf32> -> vector<2x8x64xf32>
    "tpu.trace_stop"() : () -> ()
    %58 = tpu.concatenate %39, %57 in 2 : vector<2x8x64xf32>, vector<2x8x64xf32> -> vector<2x8x128xf32>
    %59 = vector.shape_cast %58 : vector<2x8x128xf32> to vector<16x128xf32>
    %60 = arith.truncf %59 : vector<16x128xf32> to vector<16x128xbf16>
    %c0_19 = arith.constant 0 : index
    %c0_20 = arith.constant 0 : index
    %c0_21 = arith.constant 0 : index
    %61 = vector.load %arg5[%c0_19, %c0_20, %c0_21] : memref<1x128x128xbf16, #tpu.memory_space<vmem>>, vector<1x128x128xbf16>
    %62 = vector.shape_cast %61 : vector<1x128x128xbf16> to vector<128x128xbf16>
    %cst_22 = arith.constant dense<0.000000e+00> : vector<16x128xf32>
    %63 = tpu.matmul %60, %62, %cst_22 {dimension_numbers = #tpu.dot_dimension_numbers<[1], [0], [0], [1], [0, 0, 1, 1], [], []>} : vector<16x128xbf16>, vector<128x128xbf16>, vector<16x128xf32> -> vector<16x128xf32>
    %c0_23 = arith.constant 0 : index
    %c0_24 = arith.constant 0 : index
    %c0_25 = arith.constant 0 : index
    %64 = vector.load %arg6[%c0_23, %c0_24, %c0_25] : memref<1x1x128xf32, #tpu.memory_space<vmem>>, vector<1x1x128xf32>
    %65 = vector.shape_cast %64 : vector<1x1x128xf32> to vector<1x128xf32>
    %66 = vector.broadcast %65 : vector<1x128xf32> to vector<16x128xf32>
    %67 = arith.addf %63, %66 : vector<16x128xf32>
    %68 = arith.addf %4, %67 : vector<16x128xf32>
    %c0_26 = arith.constant 0 : index
    %c0_27 = arith.constant 0 : index
    %c0_28 = arith.constant 0 : index
    %69 = vector.load %arg7[%c0_26, %c0_27, %c0_28] : memref<1x1x128xf32, #tpu.memory_space<vmem>>, vector<1x1x128xf32>
    %70 = vector.shape_cast %69 : vector<1x1x128xf32> to vector<1x128xf32>
    %c0_29 = arith.constant 0 : index
    %c0_30 = arith.constant 0 : index
    %c0_31 = arith.constant 0 : index
    %71 = vector.load %arg8[%c0_29, %c0_30, %c0_31] : memref<1x1x128xf32, #tpu.memory_space<vmem>>, vector<1x1x128xf32>
    %72 = vector.shape_cast %71 : vector<1x1x128xf32> to vector<1x128xf32>
    %cst_32 = arith.constant dense<0.000000e+00> : vector<16xf32>
    %73 = vector.multi_reduction <add>, %68, %cst_32 [1] : vector<16x128xf32> to vector<16xf32>
    %74 = vector.shape_cast %73 : vector<16xf32> to vector<16x1xf32>
    %cst_33 = arith.constant 1.280000e+02 : f32
    %75 = vector.broadcast %cst_33 : f32 to vector<16x1xf32>
    %76 = arith.divf %74, %75 : vector<16x1xf32>
    %77 = vector.broadcast %76 : vector<16x1xf32> to vector<16x128xf32>
    %78 = arith.subf %68, %77 : vector<16x128xf32>
    %79 = arith.mulf %78, %78 : vector<16x128xf32>
    %cst_34 = arith.constant dense<0.000000e+00> : vector<16xf32>
    %80 = vector.multi_reduction <add>, %79, %cst_34 [1] : vector<16x128xf32> to vector<16xf32>
    %81 = vector.shape_cast %80 : vector<16xf32> to vector<16x1xf32>
    %cst_35 = arith.constant 1.280000e+02 : f32
    %82 = vector.broadcast %cst_35 : f32 to vector<16x1xf32>
    %83 = arith.divf %81, %82 : vector<16x1xf32>
    %84 = vector.broadcast %76 : vector<16x1xf32> to vector<16x128xf32>
    %85 = arith.subf %68, %84 : vector<16x128xf32>
    %cst_36 = arith.constant 9.99999996E-13 : f32
    %86 = vector.broadcast %cst_36 : f32 to vector<16x1xf32>
    %87 = arith.addf %83, %86 : vector<16x1xf32>
    %88 = math.rsqrt %87 : vector<16x1xf32>
    %89 = vector.broadcast %88 : vector<16x1xf32> to vector<16x128xf32>
    %90 = arith.mulf %85, %89 : vector<16x128xf32>
    %91 = vector.broadcast %70 : vector<1x128xf32> to vector<16x128xf32>
    %92 = arith.mulf %90, %91 : vector<16x128xf32>
    %93 = vector.broadcast %72 : vector<1x128xf32> to vector<16x128xf32>
    %94 = arith.addf %92, %93 : vector<16x128xf32>
    %95 = arith.truncf %94 : vector<16x128xf32> to vector<16x128xbf16>
    %c0_37 = arith.constant 0 : index
    %c0_38 = arith.constant 0 : index
    %c0_39 = arith.constant 0 : index
    %96 = vector.load %arg9[%c0_37, %c0_38, %c0_39] : memref<1x128x256xbf16, #tpu.memory_space<vmem>>, vector<1x128x256xbf16>
    %97 = vector.shape_cast %96 : vector<1x128x256xbf16> to vector<128x256xbf16>
    %cst_40 = arith.constant dense<0.000000e+00> : vector<16x256xf32>
    %98 = tpu.matmul %95, %97, %cst_40 {dimension_numbers = #tpu.dot_dimension_numbers<[1], [0], [0], [1], [0, 0, 1, 1], [], []>} : vector<16x128xbf16>, vector<128x256xbf16>, vector<16x256xf32> -> vector<16x256xf32>
    %c0_41 = arith.constant 0 : index
    %c0_42 = arith.constant 0 : index
    %c0_43 = arith.constant 0 : index
    %99 = vector.load %arg10[%c0_41, %c0_42, %c0_43] : memref<1x1x256xf32, #tpu.memory_space<vmem>>, vector<1x1x256xf32>
    %100 = vector.shape_cast %99 : vector<1x1x256xf32> to vector<1x256xf32>
    %101 = vector.broadcast %100 : vector<1x256xf32> to vector<16x256xf32>
    %102 = arith.addf %98, %101 : vector<16x256xf32>
    %cst_44 = arith.constant 5.000000e-01 : f32
    %103 = vector.broadcast %cst_44 : f32 to vector<16x256xf32>
    %104 = arith.mulf %103, %102 : vector<16x256xf32>
    %cst_45 = arith.constant 4.471500e-02 : f32
    %105 = vector.broadcast %cst_45 : f32 to vector<16x256xf32>
    %106 = arith.mulf %105, %102 : vector<16x256xf32>
    %107 = arith.mulf %106, %102 : vector<16x256xf32>
    %108 = arith.mulf %107, %102 : vector<16x256xf32>
    %109 = arith.addf %102, %108 : vector<16x256xf32>
    %cst_46 = arith.constant 0.797884583 : f32
    %110 = vector.broadcast %cst_46 : f32 to vector<16x256xf32>
    %111 = arith.mulf %110, %109 : vector<16x256xf32>
    %112 = math.tanh %111 : vector<16x256xf32>
    %cst_47 = arith.constant 1.000000e+00 : f32
    %113 = vector.broadcast %cst_47 : f32 to vector<16x256xf32>
    %114 = arith.addf %113, %112 : vector<16x256xf32>
    %115 = arith.mulf %104, %114 : vector<16x256xf32>
    %116 = arith.truncf %115 : vector<16x256xf32> to vector<16x256xbf16>
    %c0_48 = arith.constant 0 : index
    %c0_49 = arith.constant 0 : index
    %c0_50 = arith.constant 0 : index
    %117 = vector.load %arg11[%c0_48, %c0_49, %c0_50] : memref<1x256x128xbf16, #tpu.memory_space<vmem>>, vector<1x256x128xbf16>
    %118 = vector.shape_cast %117 : vector<1x256x128xbf16> to vector<256x128xbf16>
    %cst_51 = arith.constant dense<0.000000e+00> : vector<16x128xf32>
    %119 = tpu.matmul %116, %118, %cst_51 {dimension_numbers = #tpu.dot_dimension_numbers<[1], [0], [0], [1], [0, 0, 1, 1], [], []>} : vector<16x256xbf16>, vector<256x128xbf16>, vector<16x128xf32> -> vector<16x128xf32>
    %c0_52 = arith.constant 0 : index
    %c0_53 = arith.constant 0 : index
    %c0_54 = arith.constant 0 : index
    %120 = vector.load %arg12[%c0_52, %c0_53, %c0_54] : memref<1x1x128xf32, #tpu.memory_space<vmem>>, vector<1x1x128xf32>
    %121 = vector.shape_cast %120 : vector<1x1x128xf32> to vector<1x128xf32>
    %122 = vector.broadcast %121 : vector<1x128xf32> to vector<16x128xf32>
    %123 = arith.addf %119, %122 : vector<16x128xf32>
    %124 = arith.addf %94, %123 : vector<16x128xf32>
    %c0_55 = arith.constant 0 : index
    %c0_56 = arith.constant 0 : index
    %c0_57 = arith.constant 0 : index
    %125 = vector.load %arg13[%c0_55, %c0_56, %c0_57] : memref<1x1x128xf32, #tpu.memory_space<vmem>>, vector<1x1x128xf32>
    %126 = vector.shape_cast %125 : vector<1x1x128xf32> to vector<1x128xf32>
    %c0_58 = arith.constant 0 : index
    %c0_59 = arith.constant 0 : index
    %c0_60 = arith.constant 0 : index
    %127 = vector.load %arg14[%c0_58, %c0_59, %c0_60] : memref<1x1x128xf32, #tpu.memory_space<vmem>>, vector<1x1x128xf32>
    %128 = vector.shape_cast %127 : vector<1x1x128xf32> to vector<1x128xf32>
    %cst_61 = arith.constant dense<0.000000e+00> : vector<16xf32>
    %129 = vector.multi_reduction <add>, %124, %cst_61 [1] : vector<16x128xf32> to vector<16xf32>
    %130 = vector.shape_cast %129 : vector<16xf32> to vector<16x1xf32>
    %cst_62 = arith.constant 1.280000e+02 : f32
    %131 = vector.broadcast %cst_62 : f32 to vector<16x1xf32>
    %132 = arith.divf %130, %131 : vector<16x1xf32>
    %133 = vector.broadcast %132 : vector<16x1xf32> to vector<16x128xf32>
    %134 = arith.subf %124, %133 : vector<16x128xf32>
    %135 = arith.mulf %134, %134 : vector<16x128xf32>
    %cst_63 = arith.constant dense<0.000000e+00> : vector<16xf32>
    %136 = vector.multi_reduction <add>, %135, %cst_63 [1] : vector<16x128xf32> to vector<16xf32>
    %137 = vector.shape_cast %136 : vector<16xf32> to vector<16x1xf32>
    %cst_64 = arith.constant 1.280000e+02 : f32
    %138 = vector.broadcast %cst_64 : f32 to vector<16x1xf32>
    %139 = arith.divf %137, %138 : vector<16x1xf32>
    %140 = vector.broadcast %132 : vector<16x1xf32> to vector<16x128xf32>
    %141 = arith.subf %124, %140 : vector<16x128xf32>
    %cst_65 = arith.constant 9.99999996E-13 : f32
    %142 = vector.broadcast %cst_65 : f32 to vector<16x1xf32>
    %143 = arith.addf %139, %142 : vector<16x1xf32>
    %144 = math.rsqrt %143 : vector<16x1xf32>
    %145 = vector.broadcast %144 : vector<16x1xf32> to vector<16x128xf32>
    %146 = arith.mulf %141, %145 : vector<16x128xf32>
    %147 = vector.broadcast %126 : vector<1x128xf32> to vector<16x128xf32>
    %148 = arith.mulf %146, %147 : vector<16x128xf32>
    %149 = vector.broadcast %128 : vector<1x128xf32> to vector<16x128xf32>
    %150 = arith.addf %148, %149 : vector<16x128xf32>
    %151 = vector.shape_cast %150 : vector<16x128xf32> to vector<2x8x128xf32>
    %c1_i32 = arith.constant 1 : i32
    %152 = arith.cmpi slt, %arg1, %c1_i32 : i32
    %153 = arith.extui %152 : i1 to i32
    %c0_i32_66 = arith.constant 0 : i32
    %154 = arith.cmpi ne, %153, %c0_i32_66 : i32
    scf.if %154 {
      %c0_69 = arith.constant 0 : index
      %c0_70 = arith.constant 0 : index
      %c0_71 = arith.constant 0 : index
      %158 = vector.load %arg16[%c0_69, %c0_70, %c0_71] : memref<2x8x128xf32, #tpu.memory_space<vmem>>, vector<2x8x128xf32>
      tpu.vector_store %arg16[%c0_69, %c0_70, %c0_71], %151 {strides = array<i32>} : memref<2x8x128xf32, #tpu.memory_space<vmem>>, vector<2x8x128xf32>,
    } else {
    }
    %c1_i32_67 = arith.constant 1 : i32
    %155 = arith.cmpi eq, %arg1, %c1_i32_67 : i32
    %156 = arith.extui %155 : i1 to i32
    %c0_i32_68 = arith.constant 0 : i32
    %157 = arith.cmpi ne, %156, %c0_i32_68 : i32
    scf.if %157 {
      %158 = vector.extract_strided_slice %151 {offsets = [0, 0, 0], sizes = [2, 1, 128], strides = [1, 1, 1]} : vector<2x8x128xf32> to vector<2x1x128xf32>
      %c0_69 = arith.constant 0 : index
      %c0_70 = arith.constant 0 : index
      %c0_71 = arith.constant 0 : index
      %159 = vector.load %arg15[%c0_69, %c0_70, %c0_71] : memref<2x1x128xf32, #tpu.memory_space<vmem>>, vector<2x1x128xf32>
      tpu.vector_store %arg15[%c0_69, %c0_70, %c0_71], %158 {strides = array<i32>} : memref<2x1x128xf32, #tpu.memory_space<vmem>>, vector<2x1x128xf32>,
    } else {
    }
    return
  }
  func.func @transform_0(%arg0: i32, %arg1: i32) -> (i32, i32, i32) {
    %c0_i32 = arith.constant 0 : i32
    %c0_i32_0 = arith.constant 0 : i32
    %c0_i32_1 = arith.constant 0 : i32
    return %arg0, %c0_i32, %c0_i32_0 : i32, i32, i32
  }
  func.func @transform_1(%arg0: i32, %arg1: i32) -> (i32, i32, i32) {
    %c0_i32 = arith.constant 0 : i32
    %c0_i32_0 = arith.constant 0 : i32
    %c0_i32_1 = arith.constant 0 : i32
    return %arg1, %c0_i32, %c0_i32_0 : i32, i32, i32
  }
  func.func @transform_2(%arg0: i32, %arg1: i32) -> (i32, i32, i32) {
    %c0_i32 = arith.constant 0 : i32
    %c0_i32_0 = arith.constant 0 : i32
    %c0_i32_1 = arith.constant 0 : i32
    return %arg1, %c0_i32, %c0_i32_0 : i32, i32, i32
  }
  func.func @transform_3(%arg0: i32, %arg1: i32) -> (i32, i32, i32) {
    %c0_i32 = arith.constant 0 : i32
    %c0_i32_0 = arith.constant 0 : i32
    %c0_i32_1 = arith.constant 0 : i32
    return %arg1, %c0_i32, %c0_i32_0 : i32, i32, i32
  }
  func.func @transform_4(%arg0: i32, %arg1: i32) -> (i32, i32, i32) {
    %c0_i32 = arith.constant 0 : i32
    %c0_i32_0 = arith.constant 0 : i32
    %c0_i32_1 = arith.constant 0 : i32
    return %arg1, %c0_i32, %c0_i32_0 : i32, i32, i32
  }
  func.func @transform_5(%arg0: i32, %arg1: i32) -> (i32, i32, i32) {
    %c0_i32 = arith.constant 0 : i32
    %c0_i32_0 = arith.constant 0 : i32
    %c0_i32_1 = arith.constant 0 : i32
    return %arg1, %c0_i32, %c0_i32_0 : i32, i32, i32
  }
  func.func @transform_6(%arg0: i32, %arg1: i32) -> (i32, i32, i32) {
    %c0_i32 = arith.constant 0 : i32
    %c0_i32_0 = arith.constant 0 : i32
    %c0_i32_1 = arith.constant 0 : i32
    return %arg1, %c0_i32, %c0_i32_0 : i32, i32, i32
  }
  func.func @transform_7(%arg0: i32, %arg1: i32) -> (i32, i32, i32) {
    %c0_i32 = arith.constant 0 : i32
    %c0_i32_0 = arith.constant 0 : i32
    %c0_i32_1 = arith.constant 0 : i32
    return %arg1, %c0_i32, %c0_i32_0 : i32, i32, i32
  }
  func.func @transform_8(%arg0: i32, %arg1: i32) -> (i32, i32, i32) {
    %c0_i32 = arith.constant 0 : i32
    %c0_i32_0 = arith.constant 0 : i32
    %c0_i32_1 = arith.constant 0 : i32
    return %arg1, %c0_i32, %c0_i32_0 : i32, i32, i32
  }
  func.func @transform_9(%arg0: i32, %arg1: i32) -> (i32, i32, i32) {
    %c0_i32 = arith.constant 0 : i32
    %c0_i32_0 = arith.constant 0 : i32
    %c0_i32_1 = arith.constant 0 : i32
    return %arg1, %c0_i32, %c0_i32_0 : i32, i32, i32
  }
  func.func @transform_10(%arg0: i32, %arg1: i32) -> (i32, i32, i32) {
    %c0_i32 = arith.constant 0 : i32
    %c0_i32_0 = arith.constant 0 : i32
    %c0_i32_1 = arith.constant 0 : i32
    return %arg1, %c0_i32, %c0_i32_0 : i32, i32, i32
  }
  func.func @transform_11(%arg0: i32, %arg1: i32) -> (i32, i32, i32) {
    %c0_i32 = arith.constant 0 : i32
    %c0_i32_0 = arith.constant 0 : i32
    %c0_i32_1 = arith.constant 0 : i32
    return %arg1, %c0_i32, %c0_i32_0 : i32, i32, i32
  }
  func.func @transform_12(%arg0: i32, %arg1: i32) -> (i32, i32, i32) {
    %c0_i32 = arith.constant 0 : i32
    %c0_i32_0 = arith.constant 0 : i32
    %c0_i32_1 = arith.constant 0 : i32
    return %arg1, %c0_i32, %c0_i32_0 : i32, i32, i32
  }
  func.func @transform_13(%arg0: i32, %arg1: i32) -> (i32, i32, i32) {
    %c0_i32 = arith.constant 0 : i32
    %c0_i32_0 = arith.constant 0 : i32
    %c0_i32_1 = arith.constant 0 : i32
    return %arg0, %c0_i32, %c0_i32_0 : i32, i32, i32
  }
}

</mosaic_0001>

<bundles_post_ra>
// kernel: tpu_custom_call.1
= control target key start
LH: loop header
LB: loop body
LE: loop exit
PB: predicated region body
PF: predicated region fallthrough
CT: control target
= control target key end

     0   :  { %s3531_s0 = inlined_call_operand.hbm [shape: f32[2,8,128], index: 0, kind: input, shape index: {}]   ;;  %s3532_s1 = inlined_call_operand.hbm [shape: bf16[2,128,384], index: 1, kind: input, shape index: {}]   ;;  %s3533_s2 = inlined_call_operand.hbm [shape: f32[2,1,384], index: 2, kind: input, shape index: {}]   ;;  %s3534_s3 = inlined_call_operand.hbm [shape: bf16[2,128,128], index: 3, kind: input, shape index: {}]   ;;  %s3535_s4 = inlined_call_operand.vmem [shape: f32[2,1,128], index: 4, kind: input, shape index: {}]   ;;  %s3536_s5 = inlined_call_operand.hbm [shape: f32[2,1,128], index: 5, kind: input, shape index: {}]   ;;  %s3537_s6 = inlined_call_operand.hbm [shape: f32[2,1,128], index: 6, kind: input, shape index: {}]   ;;  %s3538_s7 = inlined_call_operand.hbm [shape: bf16[2,128,256], index: 7, kind: input, shape index: {}]   ;;  %s3539_s8 = inlined_call_operand.vmem [shape: f32[2,1,256], index: 8, kind: input, shape index: {}]   ;;  %s3540_s9 = inlined_call_operand.hbm [shape: bf16[2,256,128], index: 9, kind: input, shape index: {}]   ;;  %s3541_s10 = inlined_call_operand.vmem [shape: f32[2,1,128], index: 10, kind: input, shape index: {}]   ;;  %s3542_s11 = inlined_call_operand.vmem [shape: f32[2,1,128], index: 11, kind: input, shape index: {}]   ;;  %s3543_s12 = inlined_call_operand.hbm [shape: f32[2,1,128], index: 12, kind: input, shape index: {}]   ;;  %s3544_s13 = inlined_call_operand.hbm [shape: f32[2,1,128], index: 13, kind: output, shape index: {}]  }
   0x1   :  { %3552 = sst [smem:[#allocation29_spill]] %s3531_s0 }
   0x2   :  { %3553 = sst [smem:[#allocation30_spill]] %s3532_s1 }
   0x3   :  { %3554 = sst [smem:[#allocation31_spill]] %s3533_s2 }
   0x4   :  { %3555 = sst [smem:[#allocation32_spill]] %s3534_s3 }
   0x5   :  { %3556 = sst [smem:[#allocation33_spill]] %s3535_s4 }
   0x6   :  { %3557 = sst [smem:[#allocation34_spill]] %s3536_s5 }
   0x7   :  { %3558 = sst [smem:[#allocation35_spill]] %s3537_s6 }
   0x8   :  { %3559 = sst [smem:[#allocation36_spill]] %s3538_s7 }
   0x9   :  { %3560 = sst [smem:[#allocation37_spill]] %s3539_s8 }
   0xa   :  { %3561 = sst [smem:[#allocation38_spill]] %s3540_s9 }
   0xb   :  { %3562 = sst [smem:[#allocation39_spill]] %s3541_s10 }
   0xc   :  { %3563 = sst [smem:[#allocation40_spill]] %s3542_s11 }
   0xd   :  { %3564 = sst [smem:[#allocation41_spill]] %s3544_s13 }
   0xe   :  { %18 = vsyncpa [#allocation4], 0 }
   0xf   :  { %19 = vsyncpa [#allocation7], 0 }
  0x10   :  { %21 = vsyncpa [#allocation7 + $0x1], 0 }
  0x11   :  { %22 = vsyncpa [#allocation10], 0 }
  0x12   :  { %24 = vsyncpa [#allocation10 + $0x1], 0 }
  0x13   :  { %25 = vsyncpa [#allocation13], 0 }
  0x14   :  { %27 = vsyncpa [#allocation13 + $0x1], 0 }
  0x15   :  { %28 = vsyncpa [#allocation16], 0 }
  0x16   :  { %30 = vsyncpa [#allocation16 + $0x1], 0 }
  0x17   :  { %31 = vsyncpa [#allocation5], 0  ;;  %s3067_s25 = smov 0   ;;  %s3069_s26 = smov 0  }
  0x18   :  { %s3071_s27 = smov 0   ;;  %s3073_s28 = smov 0  }
  0x19   :  { %s3075_s29 = smov 0   ;;  %s3077_s30 = smov 0  }
  0x1a LB: > { %3565 = sst [smem:[#allocation25_spill]] %s2971_s27  ;;  %s46_s14 = sadd.s32 1, %s2979_s29  ;;  %s2983_s30 = sphi %s3077_s30, %s37_s30   ;;  %s2979_s29 = sphi %s3075_s29, %s3603_s29   ;;  %s2975_s28 = sphi %s3073_s28, %s3602_s28   ;;  %s2971_s27 = sphi %s3071_s27, %s3598_s27   ;;  %s2967_s26 = sphi %s3069_s26, %s3601_s26   ;;  %s2963_s25 = sphi %s3067_s25, %s3600_s25  }
  0x1b   : > { %3566 = sst [smem:[#allocation26_spill]] %s2975_s28  ;;  %s82_s15 = sadd.s32 1, %s2971_s27 }
  0x1c   : > { %p47_p0 = scmp.ge.s32.totalorder %s46_s14, 2  ;;  %p89_p1 = scmp.ne.s32.totalorder %s2971_s27, %s2967_s26 }
  0x1d   : > { %p90_p2 = scmp.eq.s32.totalorder %s2983_s30, 0  ;;  %p2506_p4 = scmp.lt.s32.totalorder %s2983_s30, 2 }
  0x1e   : > { %s3605_s14 = smov (%p47_p0, %s46_s14), 0  ;;  %s3108_s17 = sand.u32 1, %s2983_s30  }
  0x1f   : > { %3567 = sst [smem:[#allocation27_spill]] %s3605_s14  ;;  %p91_p3 = por %p90_p2, %p89_p1 }
  0x20   : > { %s79_s16 = ssub.s32 %s2979_s29, %s3605_s14  ;;  %s3111_s18 = sand.u32 1, %s2971_s27  }
  0x21   : > { %p80_p5 = scmp.eq.s32.totalorder %s79_s16, 0  ;;  %s2447_s19 = smul.u32 192, %s2979_s29 }
  0x22   : > { %s2446_s21 = smul.u32 192, %s3111_s18  ;;  %s3569_s1 = sld [smem:[#allocation30_spill]] }
  0x23   : > { %s3115_s20 = scalar_select %p80_p5, %s2971_s27, %s82_s15  }
  0x24   : > { %p3121_p6 = pnand %p2506_p4, %p91_p3  ;;  %s452_s16 = scalar_lea.vmem [#allocation6], %s2446_s21 }
  0x25   : > { %3568 = sst [smem:[#allocation28_spill]] %s3115_s20  ;;  %s460_s11 = sshll.u32 %s452_s16, 4  ;;  %s461_s11 = int_to_ptr.vmem [resolvable:$true] %s460_s11 }
  0x26   : > { %s3550_s15 = scalar_lea.sflag [#allocation7], %s3108_s17  ;;  %s2985_s20 = smov 192  }
  0x27   : > { %s2986_s27 = smov 12   ;;  %s2379_s22 = sshll.u32 %s2979_s29, 6 }
  0x28   : > { %s457_s24 = scalar_lea.hbm %s3569_s1, %s2447_s19  ;;  %s2093_s19 = sshll.u32 %s3111_s18, 6 }
  0x29   : > { %s458_s13 = sshll.u32 %s457_s24, 4  ;;  %s3571_s3 = sld [smem:[#allocation32_spill]]  ;;  %s459_s13 = int_to_ptr.hbm [resolvable:$true] %s458_s13 }
  0x2a   : > { %2483 = dma.hbm_to_vmem [thread:$0]  (!%p3121_p6), %s459_s13, 3072, %s461_s11, %s3550_s15, %s2985_s20, %s2985_s20, %s2986_s27  }
  0x2b   : > { %s493_s16 = scalar_lea.vmem [#allocation9], %s2093_s19  ;;  %s3548_s8 = scalar_lea.sflag [#allocation10], %s3108_s17 }
  0x2c   : > { %s501_s10 = sshll.u32 %s493_s16, 4  ;;  %s2987_s4 = smov 64   ;;  %s502_s10 = int_to_ptr.vmem [resolvable:$true] %s501_s10 }
  0x2d   : > { %s2988_s28 = smov 4   ;;  %s3572_s6 = sld [smem:[#allocation35_spill]] }
  0x2e   : > { %s537_s27 = scalar_lea.vmem [#allocation12], %s3111_s18  ;;  %s3549_s23 = scalar_lea.sflag [#allocation13], %s3108_s17 }
  0x2f   : > { %s498_s1 = scalar_lea.hbm %s3571_s3, %s2379_s22  ;;  %s544_s20 = sshll.u32 %s537_s27, 4  ;;  %s545_s20 = int_to_ptr.vmem [resolvable:$true] %s544_s20 }
  0x30   : > { %s499_s21 = sshll.u32 %s498_s1, 4  ;;  %s2096_s22 = sshll.u32 %s3111_s18, 7  ;;  %s500_s21 = int_to_ptr.hbm [resolvable:$true] %s499_s21 }
  0x31   : > { %2489 = dma.hbm_to_vmem [thread:$0]  (!%p3121_p6), %s500_s21, 1024, %s502_s10, %s3548_s8, %s2987_s4, %s2987_s4, %s2988_s28  }
  0x32   : > { %s2380_s24 = sshll.u32 %s2979_s29, 7  ;;  %s3573_s7 = sld [smem:[#allocation36_spill]] }
  0x33   : > { %s540_s1 = scalar_lea.hbm %s3572_s6, %s2979_s29  ;;  %s555_s11 = scalar_lea.vmem [#allocation14], %s2096_s22 }
  0x34   : > { %s542_s19 = sshll.u32 %s540_s1, 4  ;;  %s563_s13 = sshll.u32 %s555_s11, 4  ;;  %s543_s19 = int_to_ptr.hbm [resolvable:$true] %s542_s19  ;;  %s3158_s13 = int_to_ptr.vmem [resolvable:$true] %s563_s13 }
  0x35   : > { %2495 = dma.hbm_to_vmem [thread:$0]  (!%p3121_p6), %s543_s19, 16, %s545_s20, %s3549_s23  }
  0x36   : > { %s3574_s9 = sld [smem:[#allocation38_spill]]  ;;  %s584_s23 = scalar_lea.vmem [#allocation15], %s2096_s22 }
  0x37   : > { %s592_s15 = sshll.u32 %s584_s23, 4  ;;  %s3551_s10 = scalar_lea.sflag [#allocation16], %s3108_s17  ;;  %s593_s15 = int_to_ptr.vmem [resolvable:$true] %s592_s15 }
  0x38   : > { %s560_s16 = scalar_lea.hbm %s3573_s7, %s2380_s24  ;;  %s3174_s21 = sadd.s32 4294967295, %s2983_s30  }
  0x39   : > { %s561_s1 = sshll.u32 %s560_s16, 4  ;;  %p95_p7 = scmp.ne.s32.totalorder %s2967_s26, %s2963_s25  ;;  %s3160_s1 = int_to_ptr.hbm [resolvable:$true] %s561_s1 }
  0x3a   : > { %p96_p8 = scmp.eq.s32.totalorder %s3174_s21, 0  ;;  %p2089_p9 = scmp.ge.s32.totalorder %s2983_s30, 1 }
  0x3b   : > { %p418_p10 = scmp.lt.s32.totalorder %s2983_s30, 3  ;;  %s3576_s0 = sld [smem:[#allocation29_spill]] }
  0x3c   : > { %s589_s20 = scalar_lea.hbm %s3574_s9, %s2380_s24  ;;  %p3183_p11 = por %p96_p8, %p95_p7 }
  0x3d   : > { %s590_s19 = sshll.u32 %s589_s20, 4  ;;  %p3190_p12 = pnand %p2089_p9, %p418_p10  ;;  %s591_s19 = int_to_ptr.hbm [resolvable:$true] %s590_s19 }
  0x3e   : > { %2501 = dma.hbm_to_vmem [thread:$0]  (!%p3121_p6), %s591_s19, 2048, %s593_s15, %s3551_s10, %s2987_s4, %s2987_s4, %s2988_s28  }
  0x3f   : > { %p2476_p13 = pneg %p3190_p12  ;;  %s2989_s25 = smov [#allocation3]  }
  0x40   : > { %s434_s28 = sshll.u32 %s2989_s25, 4  ;;  %s2448_s15 = smul.u32 3, %s3111_s18  ;;  %s435_s28 = int_to_ptr.vmem [resolvable:$true] %s434_s28 }
  0x41   : > { %s432_s24 = sshll.u32 %s3576_s0, 4  ;;  %p2477_p0 = pnand %p2476_p13, %p96_p8  ;;  %s433_s24 = int_to_ptr.hbm [resolvable:$true] %s432_s24 }
  0x42   : > { %s2449_s16 = smul.u32 3, %s2979_s29  ;;  %s2990_s11 = smov 128  }
  0x43   : > { %s2991_s27 = smov 8   ;;  %s3578_s2 = sld [smem:[#allocation31_spill]] }
  0x44   : > { %2479 = dma.hbm_to_vmem [thread:$0]  (!%p2477_p0), %s433_s24, 256, %s435_s28, [#allocation4], %s2990_s11, %s2990_s11, %s2991_s27  }
  0x45   : > { %s474_s23 = scalar_lea.vmem [#allocation8], %s2448_s15  ;;  %s3579_s5 = sld [smem:[#allocation34_spill]] }
  0x46   : > { %s482_s25 = sshll.u32 %s474_s23, 4  ;;  %s3580_s7 = scalar_lea.sflag [#allocation7], %s3108_s17  ;;  %s483_s25 = int_to_ptr.vmem [resolvable:$true] %s482_s25 }
  0x47   : > { %s520_s28 = scalar_lea.vmem [#allocation11], %s3111_s18  ;;  %s3581_s15 = scalar_lea.sflag [#allocation10], %s3108_s17 }
  0x48   : > { %s527_s20 = sshll.u32 %s520_s28, 4  ;;  %s620_s0 = scalar_lea.hbm %s3543_s12, %s2979_s29  ;;  %s528_s20 = int_to_ptr.vmem [resolvable:$true] %s527_s20 }
  0x49   : > { %s478_s22 = scalar_lea.hbm %s3578_s2, %s2449_s16  ;;  %s3582_s16 = scalar_lea.sflag [#allocation13], %s3108_s17 }
  0x4a   : > { %s480_s10 = sshll.u32 %s478_s22, 4  ;;  %s622_s3 = sshll.u32 %s620_s0, 4  ;;  %s481_s10 = int_to_ptr.hbm [resolvable:$true] %s480_s10  ;;  %s623_s3 = int_to_ptr.hbm [resolvable:$true] %s622_s3 }
  0x4b   : > { %s523_s6 = scalar_lea.hbm %s3579_s5, %s2979_s29  ;;  %s617_s23 = scalar_lea.vmem [#allocation17], %s3111_s18 }
  0x4c   : > { %2486 = dma.hbm_to_vmem [thread:$0]  (!%p3121_p6), %s481_s10, 48, %s483_s25, %s3580_s7  }
  0x4d   : > { %s525_s24 = sshll.u32 %s523_s6, 4  ;;  %s624_s2 = sshll.u32 %s617_s23, 4  ;;  %s526_s24 = int_to_ptr.hbm [resolvable:$true] %s525_s24  ;;  %s625_s2 = int_to_ptr.vmem [resolvable:$true] %s624_s2 }
  0x4e   : > { %2492 = dma.hbm_to_vmem [thread:$0]  (!%p3121_p6), %s526_s24, 16, %s528_s20, %s3581_s15  }
  0x4f   : > { %2498 = dma.hbm_to_vmem [thread:$0]  (!%p3121_p6), %s3160_s1, 2048, %s3158_s13, %s3582_s16, %s2990_s11, %s2990_s11, %s2991_s27  }
  0x50   : > { %s3583_s6 = scalar_lea.sflag [#allocation16], %s3108_s17  ;;  %633 = sbr.rel (%p3190_p12) target bundleno = 2073 (0x819), region = 72 }
  0x51   : > { %2504 = dma.hbm_to_vmem [thread:$0]  (!%p3121_p6), %s623_s3, 16, %s625_s2, %s3583_s6  }
  0x55   : > { %2938 = dma.done.wait (%p96_p8), [#allocation4], 256  }
  0x56   : > { %2940 = vsyncadd (%p96_p8), [#allocation4], 4294967040  ;;  %s640_s7 = sand.u32 1, %s3174_s21   ;;  %s3239_s18 = sand.u32 1, %s2967_s26  }
  0x57   : > { %s2450_s13 = smul.u32 192, %s3239_s18  ;;  %s641_s14 = scalar_lea.sflag [#allocation7], %s640_s7 }
  0x59   : > { %s3242_s17 = scalar_lea.vmem [#allocation6], %s2450_s13 }
  0x5a   : > { %2942 = dma.done.wait (%p3183_p11), %s641_s14, 3120  }
  0x5b   : > { %2944 = vsyncadd (%p3183_p11), %s641_s14, 4294964176  ;;  %s2451_s2 = smul.u32 3, %s3239_s18  ;;  %s2104_s1 = sshll.u32 %s3239_s18, 6 }
  0x5c   : > { %s661_s4 = scalar_lea.sflag [#allocation10], %s640_s7  ;;  %s3252_s11 = scalar_lea.vmem [#allocation9], %s2104_s1 }
  0x5d   : > { %s3250_s10 = scalar_lea.vmem [#allocation8], %s2451_s2 }
  0x5e   : > { %2946 = dma.done.wait (%p3183_p11), %s661_s4, 1040  }
  0x5f   : > { %2948 = vsyncadd (%p3183_p11), %s661_s4, 4294966256  ;;  %s680_s25 = scalar_lea.sflag [#allocation13], %s640_s7 }
  0x60   : > { %2950 = dma.done.wait (%p3183_p11), %s680_s25, 2064  }
  0x61   : > { %2952 = vsyncadd (%p3183_p11), %s680_s25, 4294965232  ;;  %s2105_s28 = sshll.u32 %s3239_s18, 7  ;;  %s699_s15 = scalar_lea.sflag [#allocation16], %s640_s7 }
  0x62   : > { %s3265_s20 = scalar_lea.vmem [#allocation14], %s2105_s28  ;;  %s3267_s16 = scalar_lea.vmem [#allocation15], %s2105_s28 }
  0x63   : > { %2954 = dma.done.wait (%p3183_p11), %s699_s15, 2064  }
  0x64   : > { %2956 = vsyncadd (%p3183_p11), %s699_s15, 4294965232  ;;  %s3584_s19 = sld [smem:[#allocation26_spill]]  ;;  %s711_s9 = scalar_lea.vmem [#allocation17], %s3239_s18 }
  0x65   : > { %s3585_s23 = sld [smem:[#allocation33_spill]] }
  0x66   : > { %s3586_s2 = sld [smem:[#allocation37_spill]] }
  0x67   : > { %s3587_s25 = sld [smem:[#allocation39_spill]] }
  0x68   : > { %s3588_s27 = sld [smem:[#allocation40_spill]] }
  0x6a   : > { %p796_p1 = scmp.lt.s32.totalorder %s3584_s19, 1  ;;  %p2108_p2 = scmp.ne.s32.totalorder %s3584_s19, 0 }
  0x6c   : > { %s3275_s22 = scalar_select %p796_p1, %s3584_s19, 1 }
  0x6d   : > { %814 = sbr.rel (%p2108_p2) target bundleno = 117 (0x75), region = 112 }
  0x6e   : > { %s798_s6 = scalar_lea.vmem %s3585_s23, %s3275_s22  ;;  %s2107_s7 = sshll.u32 %s3275_s22, 1 }
  0x6f   : > { %s3285_s8 = scalar_lea.vmem %s3586_s2, %s2107_s7  ;;  %s805_s28 = scalar_lea.vmem %s3587_s25, %s3275_s22 }
  0x70   : > { %s808_s5 = scalar_lea.vmem %s3588_s27, %s3275_s22 }
  0x72   : > { %v815_v0 = vld [vmem:[#allocation3] sm:$0xff]  ;;  %v816_v1 = vld [vmem:[#allocation3 + $0x8] sm:$0xff] }
  0x73   : > { %817 = vst [vmem:[#allocation2] sm:$0xff] %v815_v0 }
  0x74   : > { %818 = vst [vmem:[#allocation2 + $0x8] sm:$0xff] %v816_v1 }
  0x75 PF: > { %v2195_v2 = vld [vmem:[%s3242_s17 + $0xa8] sm:$0xf]  ;;  %v2404_v3 = vld [vmem:[%s3242_s17 + $0xb0] sm:$0xf0]  ;;  %v2403_v4 = vld [vmem:[%s3242_s17 + $0xac] sm:$0xf] }
  0x76   : > { %v2196_v5 = vor.u32 %v2404_v3, %v2195_v2  ;;  %v2197_v6 = vld [vmem:[%s3242_s17 + $0xb4] sm:$0xf0]  ;;  %v2183_v7 = vld [vmem:[%s3242_s17 + $0x90] sm:$0xf]  ;;  %v2401_v8 = vld [vmem:[%s3242_s17 + $0x98] sm:$0xf0] }
  0x77   : > { %v2200_v9 = vor.u32 %v2403_v4, %v2197_v6  ;;  %v2400_v10 = vld [vmem:[%s3242_s17 + $0x94] sm:$0xf]  ;;  %v2185_v11 = vld [vmem:[%s3242_s17 + $0x9c] sm:$0xf0]  ;;  %v2184_v12 = vor.u32 %v2401_v8, %v2183_v7  ;;  %v2171_v14 = vld [vmem:[%s3242_s17 + $0x78] sm:$0xf] }
  0x78   : > { %990 = vmatpush.bf16.msra.mxu0 %v2196_v5  ;;  %v2188_v13 = vor.u32 %v2400_v10, %v2185_v11  ;;  %v2398_v15 = vld [vmem:[%s3242_s17 + $0x80] sm:$0xf0]  ;;  %v2397_v16 = vld [vmem:[%s3242_s17 + $0x7c] sm:$0xf]  ;;  %v2173_v17 = vld [vmem:[%s3242_s17 + $0x84] sm:$0xf0] }
  0x79   : > { %1004 = vmatpush.bf16.msra.mxu1 %v2200_v9  ;;  %v2172_v18 = vor.u32 %v2398_v15, %v2171_v14  ;;  %v2176_v19 = vor.u32 %v2397_v16, %v2173_v17  ;;  %v2159_v20 = vld [vmem:[%s3242_s17 + $0x60] sm:$0xf]  ;;  %v2395_v21 = vld [vmem:[%s3242_s17 + $0x68] sm:$0xf0]  ;;  %v2394_v22 = vld [vmem:[%s3242_s17 + $0x64] sm:$0xf] }
  0x7a   : > { %v2161_v23 = vld [vmem:[%s3242_s17 + $0x6c] sm:$0xf0]  ;;  %v2147_v24 = vld [vmem:[%s3242_s17 + $0x48] sm:$0xf]  ;;  %v2160_v25 = vor.u32 %v2395_v21, %v2159_v20  ;;  %v2392_v26 = vld [vmem:[%s3242_s17 + $0x50] sm:$0xf0] }
  0x7b   : > { %v2391_v27 = vld [vmem:[%s3242_s17 + $0x4c] sm:$0xf]  ;;  %v2164_v28 = vor.u32 %v2394_v22, %v2161_v23  ;;  %v2149_v29 = vld [vmem:[%s3242_s17 + $0x54] sm:$0xf0]  ;;  %v2148_v30 = vor.u32 %v2392_v26, %v2147_v24  ;;  %v2135_v32 = vld [vmem:[%s3242_s17 + $0x30] sm:$0xf] }
  0x7c   : > { %991 = vmatpush.bf16.msra.mxu0 %v2184_v12  ;;  %v2152_v31 = vor.u32 %v2391_v27, %v2149_v29  ;;  %v2389_v33 = vld [vmem:[%s3242_s17 + $0x38] sm:$0xf0]  ;;  %v2388_v34 = vld [vmem:[%s3242_s17 + $0x34] sm:$0xf]  ;;  %v2137_v35 = vld [vmem:[%s3242_s17 + $0x3c] sm:$0xf0] }
  0x7d   : > { %1005 = vmatpush.bf16.msra.mxu1 %v2188_v13  ;;  %v2136_v36 = vor.u32 %v2389_v33, %v2135_v32  ;;  %v2140_v37 = vor.u32 %v2388_v34, %v2137_v35  ;;  %v2123_v38 = vld [vmem:[%s3242_s17 + $0x18] sm:$0xf]  ;;  %v2386_v39 = vld [vmem:[%s3242_s17 + $0x20] sm:$0xf0]  ;;  %v2385_v40 = vld [vmem:[%s3242_s17 + $0x1c] sm:$0xf] }
  0x7e   : > { %v2125_v41 = vld [vmem:[%s3242_s17 + $0x24] sm:$0xf0]  ;;  %v2124_v42 = vor.u32 %v2386_v39, %v2123_v38  ;;  %v2111_v44 = vld [vmem:[%s3242_s17] sm:$0xf]  ;;  %v2383_v45 = vld [vmem:[%s3242_s17 + $0x8] sm:$0xf0] }
  0x7f   : > { %v2128_v43 = vor.u32 %v2385_v40, %v2125_v41  ;;  %v2382_v46 = vld [vmem:[%s3242_s17 + $0x4] sm:$0xf]  ;;  %v2113_v47 = vld [vmem:[%s3242_s17 + $0xc] sm:$0xf0]  ;;  %v2112_v48 = vor.u32 %v2383_v45, %v2111_v44  ;;  %v3331_v50 = vld [vmem:[#allocation2 + $0x8] sm:$0xff]  ;;  %vm1038_vm0 = vcmask 523264  }
  0x80   : > { %992 = vmatpush.bf16.msra.mxu0 %v2172_v18  ;;  %v3329_v49 = vld [vmem:[#allocation2] sm:$0xff]  ;;  %v2116_v51 = vor.u32 %v2382_v46, %v2113_v47  ;;  %v2203_v56 = vld [vmem:[%s3242_s17 + $0xb0] sm:$0xf]  ;;  %v2405_v57 = vld [vmem:[%s3242_s17 + $0xb8] sm:$0xf0]  ;;  %vm1079_vm1 = vcmask 64512  }
  0x81   : > { %1006 = vmatpush.bf16.msra.mxu1 %v2176_v19  ;;  %v3335_v52 = vpack.c.bf16 %v3331_v50, %v3329_v49  ;;  %v3340_v53 = vld [vmem:[%s3250_s10] sm:$0x7]  ;;  %v2191_v58 = vld [vmem:[%s3242_s17 + $0x98] sm:$0xf]  ;;  %v2204_v59 = vor.u32 %v2405_v57, %v2203_v56  ;;  %v2399_v3 = vld [vmem:[%s3242_s17 + $0x88] sm:$0xf0] }
  0x82   : > { %v856_v54 = vperm.slane %v3340_v53, 0  ;;  %v857_v55 = vperm.slane %v3340_v53, 1  ;;  %v2402_v60 = vld [vmem:[%s3242_s17 + $0xa0] sm:$0xf0]  ;;  %v2179_v2 = vld [vmem:[%s3242_s17 + $0x80] sm:$0xf] }
  0x83   : > { %1018 = vmatpush.bf16.msra.mxu2 %v2204_v59  ;;  %v2192_v63 = vor.u32 %v2402_v60, %v2191_v58  ;;  %v2180_v5 = vor.u32 %v2399_v3, %v2179_v2  ;;  %v2167_v9 = vld [vmem:[%s3242_s17 + $0x68] sm:$0xf]  ;;  %v2396_v10 = vld [vmem:[%s3242_s17 + $0x70] sm:$0xf0]  ;;  %s2992_s10 = smov 64   ;;  %vm1107_vm2 = vcmask 1043456  }
  0x84   : > { %993 = vmatpush.bf16.msra.mxu0 %v2160_v25  ;;  %v2168_v14 = vor.u32 %v2396_v10, %v2167_v9  ;;  %v2155_v17 = vld [vmem:[%s3242_s17 + $0x50] sm:$0xf]  ;;  %v2393_v18 = vld [vmem:[%s3242_s17 + $0x58] sm:$0xf0]  ;;  %v2143_v25 = vld [vmem:[%s3242_s17 + $0x38] sm:$0xf] }
  0x85   : > { %1007 = vmatpush.bf16.msra.mxu1 %v2164_v28  ;;  %v2156_v21 = vor.u32 %v2393_v18, %v2155_v17  ;;  %v2390_v26 = vld [vmem:[%s3242_s17 + $0x40] sm:$0xf0]  ;;  %v2119_v34 = vld [vmem:[%s3242_s17 + $0x8] sm:$0xf]  ;;  %v2384_v35 = vld [vmem:[%s3242_s17 + $0x10] sm:$0xf0] }
  0x86   : > { %v2144_v29 = vor.u32 %v2390_v26, %v2143_v25  ;;  %s3594_s22 = sld [smem:[#allocation26_spill]] }
  0x87   : > { %1019 = vmatpush.bf16.msra.mxu2 %v2192_v63 }
  0x88   : > { %994 = vmatpush.bf16.msra.mxu0 %v2148_v30  ;;  %v2131_v30 = vld [vmem:[%s3242_s17 + $0x20] sm:$0xf] }
  0x89   : > { %1008 = vmatpush.bf16.msra.mxu1 %v2152_v31  ;;  %v2387_v31 = vld [vmem:[%s3242_s17 + $0x28] sm:$0xf0] }
  0x8a   : > { %v2132_v33 = vor.u32 %v2387_v31, %v2131_v30 }
  0x8b   : > { %1020 = vmatpush.bf16.msra.mxu2 %v2180_v5 }
  0x8c   : > { %995 = vmatpush.bf16.msra.mxu0 %v2136_v36  ;;  %p2373_p3 = scmp.ge.s32.totalorder %s3594_s22, 1 }
  0x8d   : > { %1009 = vmatpush.bf16.msra.mxu1 %v2140_v37  ;;  %v2120_v37 = vor.u32 %v2384_v35, %v2119_v34 }
  0x8f   : > { %1021 = vmatpush.bf16.msra.mxu2 %v2168_v14 }
  0x90   : > { %996 = vmatpush.bf16.msra.mxu0 %v2124_v42 }
  0x91   : > { %1010 = vmatpush.bf16.msra.mxu1 %v2128_v43 }
  0x93   : > { %1022 = vmatpush.bf16.msra.mxu2 %v2156_v21 }
  0x94   : > { %997 = vmatpush.bf16.msra.mxu0 %v2112_v48  ;;  %v858_v48 = vperm.slane %v3340_v53, 2 }
  0x95   : > { %1011 = vmatpush.bf16.msra.mxu1 %v2116_v51 }
  0x97   : > { %998 = vmatmul.bf16.vlgmr.msra.gmra.mxu0 %v3335_v52  ;;  %1023 = vmatpush.bf16.msra.mxu2 %v2144_v29 }
  0x98   : > { %1012 = vmatmul.bf16.vlgmr.msra.gmra.mxu1 %v3335_v52 }
  0x9b   : > { %1024 = vmatpush.bf16.msra.mxu2 %v2132_v33 }
  0x9f   : > { %1025 = vmatpush.bf16.msra.mxu2 %v2120_v37 }
  0xa2   : > { %1026 = vmatmul.bf16.vlgmr.msra.gmra.mxu2 %v3335_v52 }
 0x114   : > { %v999_v61 = vpop.f32.mrf.mxu0 }
 0x115   : > { %v1013_v62 = vpop.f32.mrf.mxu1  ;;  %v1000_v0 = vadd.f32 %v999_v61, %v856_v54 }
 0x116   : > { %v1014_v1 = vadd.f32 %v1013_v62, %v857_v55 }
 0x117   : > { %v1032_v6 = vpack.c.bf16 %v1000_v0, %v1000_v0 }
 0x118   : > { %v1034_v4 = vpack.c.bf16 %v1014_v1, %v1014_v1 }
 0x119   : > { %v1144_v15 = vunpack.c.l.b16 %v1032_v6 }
 0x11a   : > { %v1043_v7 = vsel %vm1038_vm0, %v1034_v4, 0  ;;  %v1149_v8 = vunpack.c.l.b16 %v1034_v4 }
 0x11b   : > { %1052 = vmatpush.bf16.xpose.msra.mxu3 %v1043_v7  ;;  %v1145_v22 = vpack.c.b16 %v1144_v15, %v1144_v15 }
 0x11c   : > { %v1150_v11 = vpack.c.b16 %v1149_v8, %v1149_v8  ;;  %v1001_v12 = vpop.f32.mrf.mxu0 }
 0x11d   : > { %v1015_v13 = vpop.f32.mrf.mxu1  ;;  %v1002_v19 = vadd.f32 %v1001_v12, %v856_v54 }
 0x11e   : > { %v1016_v16 = vadd.f32 %v1015_v13, %v857_v55  ;;  %1151 = vrot.lane.b32.xlu0 %v1150_v11, %s2992_s10 }
 0x11f   : > { %v1033_v27 = vpack.c.bf16 %v1002_v19, %v1002_v19 }
 0x120   : > { %v1035_v20 = vpack.c.bf16 %v1016_v16, %v1016_v16 }
 0x121   : > { %v1173_v32 = vunpack.c.l.b16 %v1033_v27 }
 0x122   : > { %2205 = vmatmul.msk.bf16.vlgmr.msra.gmra.mxu3 %vm1038_vm0, %v1032_v6  ;;  %v1062_v23 = vsel %vm1038_vm0, %v1035_v20, 0  ;;  %v1178_v24 = vunpack.c.l.b16 %v1035_v20 }
 0x123   : > { %1071 = vmatpush.bf16.xpose.msrb.mxu3 %v1062_v23  ;;  %v1174_v36 = vpack.c.b16 %v1173_v32, %v1173_v32 }
 0x124   : > { %v1179_v28 = vpack.c.b16 %v1178_v24, %v1178_v24 }
 0x125   : > { %v1027_v54 = vpop.f32.mrf.mxu2 }
 0x126   : > { %1180 = vrot.lane.b32.xlu1 %v1179_v28, %s2992_s10  ;;  %1146 = vrot.lane.b32.xlu0 %v1145_v22, %s2992_s10  ;;  %v1028_v56 = vadd.f32 %v1027_v54, %v858_v48 }
 0x128   : > { %v3376_v57 = vpack.c.bf16 %v1028_v56, %v1028_v56 }
 0x12a   : > { %v1109_v58 = vsel %vm1107_vm2, %v3376_v57, 0 }
 0x12b   : > { %1118 = vmatpush.bf16.msra.mxu3 %v1109_v58  ;;  %v2413_v58 = vld [vmem:[%s3252_s11 + $0x38] sm:$0xff] }
 0x12c   : > { %1354 = vmatpush.bf16.msrb.mxu1 %v2413_v58 }
 0x12d   : > { %v1029_v60 = vpop.f32.mrf.mxu2 }
 0x12e   : > { %1175 = vrot.lane.b32.xlu1 %v1174_v36, %s2992_s10  ;;  %v1030_v61 = vadd.f32 %v1029_v60, %v858_v48  ;;  %v2411_v60 = vld [vmem:[%s3252_s11 + $0x28] sm:$0xff] }
 0x130   : > { %v1037_v62 = vpack.c.bf16 %v1030_v61, %v1030_v61  ;;  %v2410_v61 = vld [vmem:[%s3252_s11 + $0x20] sm:$0xff] }
 0x132   : > { %2206 = vmatmul.msk.bf16.vlgmr.msrb.gmra.mxu3 %vm1038_vm0, %v1033_v27  ;;  %v1128_v53 = vsel %vm1107_vm2, %v1037_v62, 0  ;;  %v1252_v12 = vunpack.c.l.b16 %v1037_v62  ;;  %v2409_v62 = vld [vmem:[%s3252_s11 + $0x18] sm:$0xff] }
 0x133   : > { %1137 = vmatpush.bf16.msrb.mxu0 %v1128_v53 }
 0x134   : > { %v1253_v15 = vpack.c.b16 %v1252_v12, %v1252_v12  ;;  %v2575_v12 = vld [vmem:[%s798_s6] ss:$0 sm:$0xff] }
 0x190   : > { %v1152_v38 = vpop.permute.xlu0 %1151 }
 0x191   : > { %v1157_v39 = vsel %vm1038_vm0, %v1152_v38, 0 }
 0x192   : > { %1166 = vmatpush.bf16.xpose.msrb.mxu2 %v1157_v39  ;;  %v1228_v39 = vunpack.c.l.b16 %v3376_v57 }
 0x198   : > { %v1181_v40 = vpop.permute.xlu1 %1180  ;;  %v1147_v41 = vpop.permute.xlu0 %1146 }
 0x199   : > { %v1186_v42 = vsel %vm1038_vm0, %v1181_v40, 0  ;;  %2209 = vmatmul.msk.bf16.vlgmr.msrb.gmra.mxu2 %vm1038_vm0, %v1147_v41  ;;  %v1229_v40 = vpack.c.b16 %v1228_v39, %v1228_v39  ;;  %v2427_v39 = vld [vmem:[%s3265_s20 + $0x64] sm:$0xf0] }
 0x19a   : > { %1195 = vmatpush.bf16.xpose.msra.mxu2 %v1186_v42 }
 0x1a0   : > { %v1176_v45 = vpop.permute.xlu1 %1175 }
 0x1a5   : > { %v1054_v43 = vpop.f32.mrf.mxu3 }
 0x1a6   : > { %v1077_v44 = vmul.f32 0.125, %v1054_v43 }
 0x1a8   : > { %v1080_v46 = vsel %vm1079_vm1, %v1077_v44, -inf }
 0x1a9   : > { %2210 = vmatmul.msk.bf16.vlgmr.msra.gmra.mxu2 %vm1038_vm0, %v1176_v45  ;;  %1081 = vmax.xlane.f32.xlu2 %v1080_v46 }
 0x1ad   : > { %v1056_v47 = vpop.f32.mrf.mxu3 }
 0x1b5   : > { %v1073_v51 = vpop.f32.mrf.mxu3 }
 0x1b6   : > { %v1078_v52 = vmul.f32 0.125, %v1073_v51 }
 0x1b8   : > { %v1083_v55 = vsel %vm1079_vm1, %v1078_v52, -inf }
 0x1b9   : > { %1084 = vmax.xlane.f32.xlu2 %v1083_v55 }
 0x1bd   : > { %v1075_v59 = vpop.f32.mrf.mxu3 }
 0x1be   : > { %v2412_v59 = vld [vmem:[%s3252_s11 + $0x30] sm:$0xff] }
 0x1bf   : > { %1355 = vmatpush.bf16.msrb.mxu1 %v2412_v59  ;;  %v2271_v59 = vld [vmem:[%s3265_s20 + $0x30] sm:$0xf] }
 0x1c3   : > { %1356 = vmatpush.bf16.msrb.mxu1 %v2411_v60  ;;  %v2421_v60 = vld [vmem:[%s3265_s20 + $0x34] sm:$0xf0] }
 0x1c7   : > { %1357 = vmatpush.bf16.msrb.mxu1 %v2410_v61  ;;  %v2420_v61 = vld [vmem:[%s3265_s20 + $0x34] sm:$0xf] }
 0x1cb   : > { %1358 = vmatpush.bf16.msrb.mxu1 %v2409_v62  ;;  %v2272_v62 = vor.u32 %v2421_v60, %v2271_v59  ;;  %v2432_v59 = vld [vmem:[%s3267_s16 + $0x10] sm:$0xff] }
 0x1cc   : > { %v2440_v60 = vld [vmem:[%s3267_s16 + $0x50] sm:$0xff] }
 0x21c   : > { %v1168_v63 = vpop.f32.mrf.mxu2  ;;  %v1082_v0 = vpop.xlane.xlu2 %1081 }
 0x21d   : > { %v1201_v1 = vmul.f32 0.125, %v1168_v63  ;;  %v1086_v2 = vsub.f32 %v1077_v44, %v1082_v0  ;;  %v2408_v63 = vld [vmem:[%s3252_s11 + $0x10] sm:$0xff]  ;;  %v2407_v0 = vld [vmem:[%s3252_s11 + $0x8] sm:$0xff] }
 0x21e   : > { %1359 = vmatpush.bf16.msrb.mxu1 %v2408_v63 }
 0x21f   : > { %v1088_v3 = vmul.f32 1.442695, %v1086_v2  ;;  %v1203_v4 = vsel %vm1079_vm1, %v1201_v1, -inf }
 0x220   : > { %1204 = vmax.xlane.f32.xlu0 %v1203_v4 }
 0x221   : > { %2581 = vpow2.f32 %v1088_v3 }
 0x222   : > { %1360 = vmatpush.bf16.msrb.mxu1 %v2407_v0  ;;  %v2263_v0 = vld [vmem:[%s3265_s20 + $0x20] sm:$0xf] }
 0x224   : > { %v1170_v5 = vpop.f32.mrf.mxu2 }
 0x225   : > { %v2406_v5 = vld [vmem:[%s3252_s11] sm:$0xff]  ;;  %s3590_s11 = scalar_lea.vmem [#allocation11], %s3239_s18 }
 0x226   : > { %1361 = vmatpush.bf16.msrb.mxu1 %v2406_v5 }
 0x227   : > { %v2582_v6 = vpop.eup %2581 }
 0x228   : > { %v1092_v7 = vsel %vm1079_vm1, %v2582_v6, 0.0 }
 0x229   : > { %1093 = vadd.xlane.f32.xlu2 %v1092_v7 }
 0x22c   : > { %v1197_v8 = vpop.f32.mrf.mxu2  ;;  %v1085_v9 = vpop.xlane.xlu2 %1084 }
 0x22d   : > { %v1202_v10 = vmul.f32 0.125, %v1197_v8  ;;  %v1087_v11 = vsub.f32 %v1078_v52, %v1085_v9 }
 0x22f   : > { %v1090_v13 = vmul.f32 1.442695, %v1087_v11  ;;  %v1206_v14 = vsel %vm1079_vm1, %v1202_v10, -inf }
 0x230   : > { %1207 = vmax.xlane.f32.xlu1 %v1206_v14 }
 0x231   : > { %2583 = vpow2.f32 %v1090_v13 }
 0x234   : > { %1254 = vrot.lane.b32.xlu0 %v1253_v15, %s2992_s10  ;;  %v1199_v16 = vpop.f32.mrf.mxu2 }
 0x237   : > { %v2584_v17 = vpop.eup %2583 }
 0x238   : > { %v1095_v18 = vsel %vm1079_vm1, %v2584_v17, 0.0 }
 0x239   : > { %1096 = vadd.xlane.f32.xlu2 %v1095_v18 }
 0x293   : > { %v1205_v19 = vpop.xlane.xlu0 %1204 }
 0x294   : > { %v1209_v20 = vsub.f32 %v1201_v1, %v1205_v19  ;;  %v2993_v19 = vmov 128.0  }
 0x296   : > { %v1211_v21 = vmul.f32 1.442695, %v1209_v20 }
 0x298   : > { %2585 = vpow2.f32 %v1211_v21 }
 0x29c   : > { %v1094_v22 = vpop.xlane.xlu2 %1093 }
 0x29d   : > { %2587 = vrcp.f32 %v1094_v22 }
 0x29e   : > { %v2586_v23 = vpop.eup %2585 }
 0x29f   : > { %v1215_v24 = vsel %vm1079_vm1, %v2586_v23, 0.0 }
 0x2a0   : > { %1216 = vadd.xlane.f32.xlu2 %v1215_v24 }
 0x2a3   : > { %v2588_v25 = vpop.eup %2587  ;;  %v1208_v26 = vpop.xlane.xlu1 %1207 }
 0x2a4   : > { %v1100_v27 = vmul.f32 %v2588_v25, %v2582_v6  ;;  %v1210_v28 = vsub.f32 %v1202_v10, %v1208_v26 }
 0x2a6   : > { %v1102_v29 = vpack.c.bf16 %v1100_v27, %v1100_v27  ;;  %v1213_v30 = vmul.f32 1.442695, %v1210_v28  ;;  %v1255_v31 = vpop.permute.xlu0 %1254 }
 0x2a7   : > { %v1260_v32 = vsel %vm1107_vm2, %v1255_v31, 0 }
 0x2a8   : > { %2589 = vpow2.f32 %v1213_v30  ;;  %2207 = vmatmul.msk.bf16.vlgmr.msra.gmra.mxu3 %vm1079_vm1, %v1102_v29  ;;  %1269 = vmatpush.bf16.msra.mxu0 %v1260_v32  ;;  %v2303_v32 = vld [vmem:[%s3265_s20 + $0x70] sm:$0xf] }
 0x2ac   : > { %v1097_v33 = vpop.xlane.xlu2 %1096 }
 0x2ad   : > { %2591 = vrcp.f32 %v1097_v33  ;;  %v2429_v33 = vld [vmem:[%s3265_s20 + $0x74] sm:$0xf0] }
 0x2ae   : > { %v2590_v34 = vpop.eup %2589 }
 0x2af   : > { %v1218_v35 = vsel %vm1079_vm1, %v2590_v34, 0.0 }
 0x2b0   : > { %1219 = vadd.xlane.f32.xlu2 %v1218_v35  ;;  %v2304_v35 = vor.u32 %v2429_v33, %v2303_v32 }
 0x2b2   : > { %1532 = vmatpush.bf16.msrb.mxu2 %v2304_v35 }
 0x2b3   : > { %v2592_v36 = vpop.eup %2591 }
 0x2b4   : > { %v1101_v37 = vmul.f32 %v2592_v36, %v2584_v17  ;;  %v2305_v36 = vld [vmem:[%s3265_s20 + $0x78] sm:$0xf0] }
 0x2b6   : > { %v1103_v38 = vpack.c.bf16 %v1101_v37, %v1101_v37 }
 0x2b8   : > { %2208 = vmatmul.msk.bf16.vlgmr.msrb.gmra.mxu0 %vm1079_vm1, %v1103_v38  ;;  %v2295_v38 = vld [vmem:[%s3265_s20 + $0x60] sm:$0xf] }
 0x2c8   : > { %1230 = vrot.lane.b32.xlu2 %v1229_v40, %s2992_s10  ;;  %v2426_v40 = vld [vmem:[%s3265_s20 + $0x64] sm:$0xf] }
 0x313   : > { %v1217_v41 = vpop.xlane.xlu2 %1216 }
 0x314   : > { %2593 = vrcp.f32 %v1217_v41  ;;  %v2296_v41 = vor.u32 %v2427_v39, %v2295_v38  ;;  %v2576_v38 = vld [vmem:[%s3590_s11] ss:$0 sm:$0xff] }
 0x316   : > { %1533 = vmatpush.bf16.msrb.mxu2 %v2296_v41 }
 0x31a   : > { %v2594_v43 = vpop.eup %2593 }
 0x31b   : > { %v1223_v45 = vmul.f32 %v2594_v43, %v2586_v23 }
 0x31d   : > { %v1225_v54 = vpack.c.bf16 %v1223_v45, %v1223_v45  ;;  %v2425_v45 = vld [vmem:[%s3265_s20 + $0x54] sm:$0xf0] }
 0x323   : > { %v1220_v42 = vpop.xlane.xlu2 %1219 }
 0x324   : > { %2595 = vrcp.f32 %v1220_v42  ;;  %v2297_v42 = vld [vmem:[%s3265_s20 + $0x68] sm:$0xf0] }
 0x325   : > { %2597 = vrcp.f32 %v2993_v19  ;;  %v2300_v43 = vor.u32 %v2426_v40, %v2297_v42 }
 0x32a   : > { %v2596_v44 = vpop.eup %2595 }
 0x32b   : > { %v1224_v46 = vmul.f32 %v2596_v44, %v2590_v34  ;;  %v1231_v47 = vpop.permute.xlu2 %1230  ;;  %v1120_v48 = vpop.f32.mrf.mxu3  ;;  %v2428_v34 = vld [vmem:[%s3265_s20 + $0x74] sm:$0xf]  ;;  %v2287_v44 = vld [vmem:[%s3265_s20 + $0x50] sm:$0xf] }
 0x32c   : > { %v1236_v51 = vsel %vm1107_vm2, %v1231_v47, 0  ;;  %v2598_v20 = vpop.eup %2597  ;;  %v2308_v37 = vor.u32 %v2428_v34, %v2305_v36  ;;  %v2288_v47 = vor.u32 %v2425_v45, %v2287_v44 }
 0x32d   : > { %v1226_v52 = vpack.c.bf16 %v1224_v46, %v1224_v46  ;;  %1245 = vmatpush.bf16.msrb.mxu3 %v1236_v51  ;;  %v1377_v21 = vmul.f32 128.0, %v2598_v20  ;;  %vm1381_vm3 = vweird.f32 %v2598_v20  ;;  %v2424_v46 = vld [vmem:[%s3265_s20 + $0x54] sm:$0xf] }
 0x32e   : > { %1534 = vmatpush.bf16.msrb.mxu2 %v2288_v47  ;;  %v2437_v47 = vld [vmem:[%s3267_s16 + $0x38] sm:$0xff] }
 0x32f   : > { %2212 = vmatmul.msk.bf16.vlgmr.msra.gmra.mxu0 %vm1079_vm1, %v1226_v52  ;;  %v1378_v22 = vsub.f32 1.0, %v1377_v21  ;;  %v2279_v52 = vld [vmem:[%s3265_s20 + $0x40] sm:$0xf] }
 0x330   : > { %2211 = vmatmul.msk.bf16.vlgmr.msrb.gmra.mxu3 %vm1079_vm1, %v1225_v54  ;;  %v2423_v54 = vld [vmem:[%s3265_s20 + $0x44] sm:$0xf0]  ;;  %1730 = vmatpush.bf16.msrb.mxu0 %v2437_v47 }
 0x331   : > { %v1379_v23 = vmul.f32 %v2598_v20, %v1378_v22  ;;  %1546 = vmatpush.bf16.msra.mxu3 %v2308_v37 }
 0x333   : > { %v1122_v55 = vpop.f32.mrf.mxu3  ;;  %v1380_v24 = vadd.f32 %v2598_v20, %v1379_v23 }
 0x334   : > { %v2422_v55 = vld [vmem:[%s3265_s20 + $0x44] sm:$0xf] }
 0x335   : > { %v1139_v56 = vpop.f32.mrf.mxu0  ;;  %v3414_v25 = vsel %vm1381_vm3, %v2598_v20, %v1380_v24  ;;  %1547 = vmatpush.bf16.msra.mxu3 %v2300_v43 }
 0x33d   : > { %v1141_v57 = vpop.f32.mrf.mxu0 }
 0x33e   : > { %v2281_v57 = vld [vmem:[%s3265_s20 + $0x48] sm:$0xf0] }
 0x33f   : > { %v2284_v58 = vor.u32 %v2422_v55, %v2281_v57  ;;  %v2434_v55 = vld [vmem:[%s3267_s16 + $0x20] sm:$0xff]  ;;  %v2433_v57 = vld [vmem:[%s3267_s16 + $0x18] sm:$0xff] }
 0x3ac   : > { %v1271_v53 = vpop.f32.mrf.mxu0 }
 0x3b3   : > { %v1247_v1 = vpop.f32.mrf.mxu3 }
 0x3b4   : > { %v2570_v2 = vpack.i.bf16 %v1271_v53, %v1247_v1  ;;  %v1273_v3 = vpop.f32.mrf.mxu0  ;;  %v2273_v53 = vld [vmem:[%s3265_s20 + $0x38] sm:$0xf0]  ;;  %v2419_v1 = vld [vmem:[%s3265_s20 + $0x24] sm:$0xf0] }
 0x3b5   : > { %v2276_v63 = vor.u32 %v2420_v61, %v2273_v53  ;;  %v2264_v3 = vor.u32 %v2419_v1, %v2263_v0  ;;  %v2431_v61 = vld [vmem:[%s3267_s16 + $0x8] sm:$0xff]  ;;  %v1446_v53 = vld [vmem:[%s3285_s8] sm:$0x3]  ;;  %v2438_v0 = vld [vmem:[%s3267_s16 + $0x40] sm:$0xff] }
 0x3b6   : > { %2571 = vrot.lane.b32.xlu1 %v2570_v2, %s2992_s10  ;;  %v2418_v2 = vld [vmem:[%s3265_s20 + $0x24] sm:$0xf]  ;;  %v1448_v1 = vperm.slane %v1446_v53, 0 }
 0x3bb   : > { %v1249_v4 = vpop.f32.mrf.mxu3 }
 0x3bc   : > { %v2265_v4 = vld [vmem:[%s3265_s20 + $0x28] sm:$0xf0] }
 0x3bd   : > { %v2268_v5 = vor.u32 %v2418_v2, %v2265_v4  ;;  %v1449_v2 = vperm.slane %v1446_v53, 1 }
 0x428   : > { %v2572_v6 = vpop.permute.xlu1 %2571 }
 0x429   : > { %v2574_v7 = vunpack.i.h.bf16 %v2572_v6  ;;  %v2573_v8 = vunpack.i.l.bf16 %v2572_v6  ;;  %v2255_v6 = vld [vmem:[%s3265_s20 + $0x10] sm:$0xf] }
 0x42b   : > { %v1283_v9 = vsel %vm1038_vm0, %v1120_v48, %v2573_v8  ;;  %v1284_v10 = vsel %vm1038_vm0, %v1139_v56, %v2574_v7  ;;  %v2289_v48 = vld [vmem:[%s3265_s20 + $0x58] sm:$0xf0]  ;;  %v2280_v56 = vor.u32 %v2423_v54, %v2279_v52  ;;  %v2417_v7 = vld [vmem:[%s3265_s20 + $0x14] sm:$0xf0]  ;;  %v2416_v8 = vld [vmem:[%s3265_s20 + $0x14] sm:$0xf] }
 0x42c   : > { %v1285_v11 = vpack.c.bf16 %v1284_v10, %v1283_v9  ;;  %v2292_v51 = vor.u32 %v2424_v46, %v2289_v48  ;;  %v2256_v9 = vor.u32 %v2417_v7, %v2255_v6  ;;  %v2257_v10 = vld [vmem:[%s3265_s20 + $0x18] sm:$0xf0]  ;;  %v2436_v48 = vld [vmem:[%s3267_s16 + $0x30] sm:$0xff]  ;;  %v2435_v52 = vld [vmem:[%s3267_s16 + $0x28] sm:$0xff] }
 0x42d   : > { %1535 = vmatpush.bf16.msrb.mxu2 %v2280_v56  ;;  %1731 = vmatpush.bf16.msrb.mxu0 %v2436_v48  ;;  %v2443_v54 = vld [vmem:[%s3267_s16 + $0x68] sm:$0xff]  ;;  %v2442_v56 = vld [vmem:[%s3267_s16 + $0x60] sm:$0xff] }
 0x42e   : > { %1362 = vmatmul.bf16.vlgmr.msrb.gmra.mxu1 %v1285_v11  ;;  %1548 = vmatpush.bf16.msra.mxu3 %v2292_v51  ;;  %v2260_v11 = vor.u32 %v2416_v8, %v2257_v10  ;;  %v2444_v51 = vld [vmem:[%s3267_s16 + $0x70] sm:$0xff] }
 0x431   : > { %1536 = vmatpush.bf16.msrb.mxu2 %v2272_v62  ;;  %1732 = vmatpush.bf16.msrb.mxu0 %v2435_v52  ;;  %v2439_v62 = vld [vmem:[%s3267_s16 + $0x48] sm:$0xff]  ;;  %v2578_v52 = vld [vmem:[%s805_s28] ss:$0 sm:$0xff] }
 0x432   : > { %1549 = vmatpush.bf16.msra.mxu3 %v2284_v58  ;;  %v2441_v58 = vld [vmem:[%s3267_s16 + $0x58] sm:$0xff] }
 0x435   : > { %1537 = vmatpush.bf16.msrb.mxu2 %v2264_v3  ;;  %1733 = vmatpush.bf16.msrb.mxu0 %v2434_v55 }
 0x436   : > { %1550 = vmatpush.bf16.msra.mxu3 %v2276_v63  ;;  %v2430_v63 = vld [vmem:[%s3267_s16] sm:$0xff] }
 0x439   : > { %1538 = vmatpush.bf16.msrb.mxu2 %v2256_v9  ;;  %1734 = vmatpush.bf16.msrb.mxu0 %v2433_v57 }
 0x43a   : > { %1551 = vmatpush.bf16.msra.mxu3 %v2268_v5 }
 0x43d   : > { %1735 = vmatpush.bf16.msrb.mxu0 %v2432_v59 }
 0x43e   : > { %1552 = vmatpush.bf16.msra.mxu3 %v2260_v11 }
 0x441   : > { %1736 = vmatpush.bf16.msrb.mxu0 %v2431_v61 }
 0x445   : > { %1737 = vmatpush.bf16.msrb.mxu0 %v2430_v63 }
 0x4ab   : > { %v1363_v13 = vpop.f32.mrf.mxu1 }
 0x4ac   : > { %v1364_v14 = vadd.f32 %v2575_v12, %v1363_v13  ;;  %v2415_v13 = vld [vmem:[%s3265_s20 + $0x4] sm:$0xf0] }
 0x4ae   : > { %v1368_v15 = vadd.f32 %v1364_v14, %v3329_v49  ;;  %v2414_v14 = vld [vmem:[%s3265_s20 + $0x4] sm:$0xf] }
 0x4b0   : > { %1372 = vadd.xlane.f32.xlu2 %v1368_v15 }
 0x4b3   : > { %v1365_v16 = vpop.f32.mrf.mxu1 }
 0x4b4   : > { %v1366_v17 = vadd.f32 %v2575_v12, %v1365_v16  ;;  %v2247_v12 = vld [vmem:[%s3265_s20] sm:$0xf] }
 0x4b5   : > { %v2248_v16 = vor.u32 %v2415_v13, %v2247_v12 }
 0x4b6   : > { %v1369_v18 = vadd.f32 %v1366_v17, %v3331_v50  ;;  %v2249_v17 = vld [vmem:[%s3265_s20 + $0x8] sm:$0xf0]  ;;  %s3591_s20 = scalar_lea.vmem [#allocation12], %s3239_s18 }
 0x4b7   : > { %v2252_v19 = vor.u32 %v2414_v14, %v2249_v17  ;;  %1539 = vmatpush.bf16.msrb.mxu2 %v2248_v16  ;;  %v2577_v43 = vld [vmem:[%s3591_s20] ss:$0 sm:$0xff] }
 0x4b8   : > { %1374 = vadd.xlane.f32.xlu0 %v1369_v18 }
 0x4b9   : > { %1553 = vmatpush.bf16.msra.mxu3 %v2252_v19 }
 0x523   : > { %v1373_v49 = vpop.xlane.xlu2 %1372 }
 0x524   : > { %v1383_v26 = vmul.f32 %v3414_v25, %v1373_v49 }
 0x526   : > { %v3417_v27 = vsub.f32 %v1368_v15, %v1383_v26 }
 0x528   : > { %v1387_v50 = vmul.f32 %v3417_v27, %v3417_v27 }
 0x52a   : > { %1389 = vadd.xlane.f32.xlu1 %v1387_v50 }
 0x52b   : > { %v1375_v28 = vpop.xlane.xlu0 %1374 }
 0x52c   : > { %v1384_v29 = vmul.f32 %v3414_v25, %v1375_v28 }
 0x52e   : > { %v3422_v30 = vsub.f32 %v1369_v18, %v1384_v29 }
 0x530   : > { %v1388_v31 = vmul.f32 %v3422_v30, %v3422_v30 }
 0x532   : > { %1391 = vadd.xlane.f32.xlu2 %v1388_v31 }
 0x59d   : > { %v1390_v15 = vpop.xlane.xlu1 %1389 }
 0x59e   : > { %v1393_v18 = vmul.f32 %v1390_v15, %v3414_v25 }
 0x5a0   : > { %v1395_v20 = vadd.f32 1e-12, %v1393_v18 }
 0x5a2   : > { %2599 = vrsqrt.f32 %v1395_v20  ;;  %vm1403_vm5 = vweird.f32 %v1395_v20 }
 0x5a5   : > { %v1392_v21 = vpop.xlane.xlu2 %1391 }
 0x5a6   : > { %v1394_v22 = vmul.f32 %v1392_v21, %v3414_v25 }
 0x5a8   : > { %v2600_v23 = vpop.eup %2599  ;;  %v1396_v24 = vadd.f32 1e-12, %v1394_v22 }
 0x5a9   : > { %v1398_v49 = vmul.f32 %v2600_v23, %v1395_v20  ;;  %vm1404_vm4 = vweird.f32 %v2600_v23 }
 0x5aa   : > { %2601 = vrsqrt.f32 %v1396_v24  ;;  %vm1405_vm6 = vmor %vm1403_vm5, %vm1404_vm4  ;;  %vm1413_vm8 = vweird.f32 %v1396_v24 }
 0x5ab   : > { %v1399_v26 = vmul.f32 %v2600_v23, %v1398_v49 }
 0x5ad   : > { %v1400_v50 = vmul.f32 0.5, %v1399_v26 }
 0x5af   : > { %v1401_v28 = vsub.f32 1.5, %v1400_v50 }
 0x5b0   : > { %v2602_v29 = vpop.eup %2601 }
 0x5b1   : > { %v1402_v31 = vmul.f32 %v2600_v23, %v1401_v28  ;;  %v1408_v32 = vmul.f32 %v2602_v29, %v1396_v24  ;;  %vm1414_vm7 = vweird.f32 %v2602_v29 }
 0x5b2   : > { %vm1415_vm9 = vmor %vm1413_vm8, %vm1414_vm7 }
 0x5b3   : > { %v1409_v33 = vmul.f32 %v2602_v29, %v1408_v32  ;;  %v1406_v34 = vsel %vm1405_vm6, %v2600_v23, %v1402_v31 }
 0x5b4   : > { %v1417_v37 = vmul.f32 %v1406_v34, %v3417_v27 }
 0x5b5   : > { %v1410_v35 = vmul.f32 0.5, %v1409_v33 }
 0x5b6   : > { %v1422_v42 = vmul.f32 %v2576_v38, %v1417_v37 }
 0x5b7   : > { %v1411_v36 = vsub.f32 1.5, %v1410_v35 }
 0x5b8   : > { %v3466_v45 = vadd.f32 %v2577_v43, %v1422_v42 }
 0x5b9   : > { %v1412_v39 = vmul.f32 %v2602_v29, %v1411_v36 }
 0x5bb   : > { %v1416_v40 = vsel %vm1415_vm9, %v2602_v29, %v1412_v39 }
 0x5bc   : > { %v1418_v41 = vmul.f32 %v1416_v40, %v3422_v30  ;;  %v2445_v30 = vld [vmem:[%s3267_s16 + $0x78] sm:$0xff] }
 0x5bd   : > { %1744 = vmatpush.bf16.msra.mxu1 %v2445_v30 }
 0x5be   : > { %v1423_v44 = vmul.f32 %v2576_v38, %v1418_v41 }
 0x5c0   : > { %v3468_v27 = vadd.f32 %v2577_v43, %v1423_v44 }
 0x5c1   : > { %1745 = vmatpush.bf16.msra.mxu1 %v2444_v51 }
 0x5c2   : > { %v1429_v46 = vpack.c.bf16 %v3468_v27, %v3466_v45 }
 0x5c4   : > { %1540 = vmatmul.bf16.vlgmr.msrb.gmra.mxu2 %v1429_v46  ;;  %1554 = vmatmul.bf16.vlgmr.msra.gmra.mxu3 %v1429_v46 }
 0x5c5   : > { %1746 = vmatpush.bf16.msra.mxu1 %v2443_v54 }
 0x5c9   : > { %1747 = vmatpush.bf16.msra.mxu1 %v2442_v56 }
 0x5cd   : > { %1748 = vmatpush.bf16.msra.mxu1 %v2441_v58 }
 0x5d1   : > { %1749 = vmatpush.bf16.msra.mxu1 %v2440_v60 }
 0x5d5   : > { %1750 = vmatpush.bf16.msra.mxu1 %v2439_v62 }
 0x5d9   : > { %1751 = vmatpush.bf16.msra.mxu1 %v2438_v0 }
 0x647   : > { %v1541_v3 = vpop.f32.mrf.mxu2  ;;  %v1555_v4 = vpop.f32.mrf.mxu3 }
 0x648   : > { %v1542_v5 = vadd.f32 %v1541_v3, %v1448_v1  ;;  %v1556_v6 = vadd.f32 %v1555_v4, %v1449_v2 }
 0x64a   : > { %v1564_v7 = vmul.f32 0.044715, %v1542_v5  ;;  %v1565_v8 = vmul.f32 0.044715, %v1556_v6  ;;  %v1560_v38 = vmul.f32 0.5, %v1542_v5  ;;  %v1561_v41 = vmul.f32 0.5, %v1556_v6 }
 0x64c   : > { %v1568_v9 = vmul.f32 %v1564_v7, %v1542_v5  ;;  %v1569_v10 = vmul.f32 %v1565_v8, %v1556_v6 }
 0x64e   : > { %v1572_v11 = vmul.f32 %v1568_v9, %v1542_v5  ;;  %v1573_v12 = vmul.f32 %v1569_v10, %v1556_v6 }
 0x64f   : > { %v1543_v13 = vpop.f32.mrf.mxu2  ;;  %v1557_v14 = vpop.f32.mrf.mxu3 }
 0x650   : > { %v1576_v15 = vadd.f32 %v1572_v11, %v1542_v5  ;;  %v1544_v16 = vadd.f32 %v1543_v13, %v1448_v1  ;;  %v1558_v17 = vadd.f32 %v1557_v14, %v1449_v2  ;;  %v1577_v18 = vadd.f32 %v1573_v12, %v1556_v6 }
 0x652   : > { %v1566_v19 = vmul.f32 0.044715, %v1544_v16  ;;  %v1567_v20 = vmul.f32 0.044715, %v1558_v17  ;;  %v1580_v21 = vmul.f32 0.7978846, %v1576_v15 }
 0x653   : > { %v1581_v23 = vmul.f32 0.7978846, %v1577_v18  ;;  %v1562_v39 = vmul.f32 0.5, %v1544_v16  ;;  %v1563_v42 = vmul.f32 0.5, %v1558_v17 }
 0x654   : > { %v1570_v22 = vmul.f32 %v1566_v19, %v1544_v16  ;;  %v1571_v24 = vmul.f32 %v1567_v20, %v1558_v17  ;;  %2603 = vtanh.f32 %v1580_v21  ;;  %v2579_v19 = vld [vmem:[%s808_s5] ss:$0 sm:$0xff] }
 0x655   : > { %2605 = vtanh.f32 %v1581_v23  ;;  %v2580_v21 = vld [vmem:[%s711_s9] ss:$0 sm:$0xff] }
 0x656   : > { %v1574_v49 = vmul.f32 %v1570_v22, %v1544_v16  ;;  %v1575_v26 = vmul.f32 %v1571_v24, %v1558_v17 }
 0x658   : > { %v1578_v50 = vadd.f32 %v1574_v49, %v1544_v16  ;;  %v1579_v28 = vadd.f32 %v1575_v26, %v1558_v17 }
 0x65a   : > { %v1582_v29 = vmul.f32 0.7978846, %v1578_v50  ;;  %v1583_v31 = vmul.f32 0.7978846, %v1579_v28  ;;  %v2604_v32 = vpop.eup %2603 }
 0x65b   : > { %v2606_v33 = vpop.eup %2605  ;;  %v1588_v34 = vadd.f32 1.0, %v2604_v32 }
 0x65c   : > { %2607 = vtanh.f32 %v1582_v29  ;;  %v1589_v36 = vadd.f32 1.0, %v2606_v33 }
 0x65d   : > { %2609 = vtanh.f32 %v1583_v31  ;;  %v1592_v44 = vmul.f32 %v1588_v34, %v1560_v38 }
 0x65e   : > { %v1593_v47 = vmul.f32 %v1589_v36, %v1561_v41 }
 0x662   : > { %v2608_v35 = vpop.eup %2607 }
 0x663   : > { %v2610_v37 = vpop.eup %2609  ;;  %v1590_v40 = vadd.f32 1.0, %v2608_v35 }
 0x664   : > { %v1591_v43 = vadd.f32 1.0, %v2610_v37 }
 0x665   : > { %v1594_v46 = vmul.f32 %v1590_v40, %v1562_v39 }
 0x666   : > { %v1595_v30 = vmul.f32 %v1591_v43, %v1563_v42 }
 0x667   : > { %v1596_v48 = vpack.c.bf16 %v1594_v46, %v1592_v44 }
 0x668   : > { %v1597_v51 = vpack.c.bf16 %v1595_v30, %v1593_v47 }
 0x669   : > { %1738 = vmatmul.bf16.vlgmr.msrb.gmra.mxu0 %v1596_v48 }
 0x66a   : > { %1752 = vmatmul.bf16.vlgmr.msra.gmra.mxu1 %v1597_v51 }
 0x6e6   : > { %v1739_v54 = vpop.f32.mrf.mxu0 }
 0x6e7   : > { %v1740_v55 = vadd.f32 %v2578_v52, %v1739_v54  ;;  %v1753_v56 = vpop.f32.mrf.mxu1 }
 0x6e9   : > { %v1754_v57 = vadd.f32 %v1753_v56, %v1740_v55 }
 0x6eb   : > { %v1758_v58 = vadd.f32 %v1754_v57, %v3466_v45 }
 0x6ed   : > { %1762 = vadd.xlane.f32.xlu0 %v1758_v58 }
 0x6ee   : > { %v1741_v59 = vpop.f32.mrf.mxu0 }
 0x6ef   : > { %v1742_v60 = vadd.f32 %v2578_v52, %v1741_v59  ;;  %v1755_v61 = vpop.f32.mrf.mxu1 }
 0x6f1   : > { %v1756_v62 = vadd.f32 %v1755_v61, %v1742_v60 }
 0x6f3   : > { %v1759_v53 = vadd.f32 %v1756_v62, %v3468_v27 }
 0x6f5   : > { %1764 = vadd.xlane.f32.xlu2 %v1759_v53 }
 0x760   : > { %v1763_v63 = vpop.xlane.xlu0 %1762 }
 0x761   : > { %v1766_v0 = vmul.f32 %v1763_v63, %v3414_v25 }
 0x763   : > { %v1768_v1 = vsub.f32 %v1758_v58, %v1766_v0 }
 0x765   : > { %v1770_v2 = vmul.f32 %v1768_v1, %v1768_v1 }
 0x767   : > { %1772 = vadd.xlane.f32.xlu1 %v1770_v2 }
 0x768   : > { %v1765_v3 = vpop.xlane.xlu2 %1764 }
 0x769   : > { %v1767_v4 = vmul.f32 %v1765_v3, %v3414_v25 }
 0x76b   : > { %v1769_v5 = vsub.f32 %v1759_v53, %v1767_v4 }
 0x76d   : > { %v1771_v6 = vmul.f32 %v1769_v5, %v1769_v5 }
 0x76f   : > { %1774 = vadd.xlane.f32.xlu0 %v1771_v6 }
 0x7da   : > { %v1773_v45 = vpop.xlane.xlu1 %1772 }
 0x7db   : > { %v1776_v7 = vmul.f32 %v1773_v45, %v3414_v25 }
 0x7dd   : > { %v1778_v8 = vadd.f32 1e-12, %v1776_v7 }
 0x7df   : > { %2611 = vrsqrt.f32 %v1778_v8  ;;  %vm1786_vm11 = vweird.f32 %v1778_v8 }
 0x7e2   : > { %v1775_v27 = vpop.xlane.xlu0 %1774 }
 0x7e3   : > { %v1777_v9 = vmul.f32 %v1775_v27, %v3414_v25 }
 0x7e5   : > { %v2612_v10 = vpop.eup %2611  ;;  %v1779_v11 = vadd.f32 1e-12, %v1777_v9 }
 0x7e6   : > { %v1781_v12 = vmul.f32 %v2612_v10, %v1778_v8  ;;  %vm1787_vm10 = vweird.f32 %v2612_v10 }
 0x7e7   : > { %2613 = vrsqrt.f32 %v1779_v11  ;;  %vm1788_vm12 = vmor %vm1786_vm11, %vm1787_vm10  ;;  %vm1796_vm14 = vweird.f32 %v1779_v11 }
 0x7e8   : > { %v1782_v13 = vmul.f32 %v2612_v10, %v1781_v12 }
 0x7ea   : > { %v1783_v14 = vmul.f32 0.5, %v1782_v13 }
 0x7ec   : > { %v1784_v15 = vsub.f32 1.5, %v1783_v14 }
 0x7ed   : > { %v2614_v16 = vpop.eup %2613 }
 0x7ee   : > { %v1785_v17 = vmul.f32 %v2612_v10, %v1784_v15  ;;  %v1791_v18 = vmul.f32 %v2614_v16, %v1779_v11  ;;  %vm1797_vm13 = vweird.f32 %v2614_v16 }
 0x7ef   : > { %vm1798_vm15 = vmor %vm1796_vm14, %vm1797_vm13 }
 0x7f0   : > { %v1789_v25 = vsel %vm1788_vm12, %v2612_v10, %v1785_v17  ;;  %v1792_v20 = vmul.f32 %v2614_v16, %v1791_v18 }
 0x7f1   : > { %v1800_v22 = vmul.f32 %v1789_v25, %v1768_v1 }
 0x7f2   : > { %v1793_v23 = vmul.f32 0.5, %v1792_v20 }
 0x7f3   : > { %v1805_v24 = vmul.f32 %v2579_v19, %v1800_v22 }
 0x7f4   : > { %v1794_v49 = vsub.f32 1.5, %v1793_v23 }
 0x7f5   : > { %v1810_v26 = vadd.f32 %v2580_v21, %v1805_v24 }
 0x7f6   : > { %v1795_v50 = vmul.f32 %v2614_v16, %v1794_v49 }
 0x7f8   : > { %v1799_v28 = vsel %vm1798_vm15, %v2614_v16, %v1795_v50 }
 0x7f9   : > { %v1801_v29 = vmul.f32 %v1799_v28, %v1769_v5  ;;  %1815 = sbr.rel (%p2373_p3) target bundleno = 2048 (0x800), region = 116 }
 0x7fb   : > { %v1806_v31 = vmul.f32 %v2579_v19, %v1801_v29 }
 0x7fd   : > { %v1811_v32 = vadd.f32 %v2580_v21, %v1806_v31 }
 0x7fe   : > { %1816 = vst [vmem:[#allocation2] sm:$0xff] %v1810_v26 }
 0x7ff   : > { %1817 = vst [vmem:[#allocation2 + $0x8] sm:$0xff] %v1811_v32 }
 0x800 PF: > { %s3595_s5 = sld [smem:[#allocation26_spill]] }
 0x806   : > { %p2374_p4 = scmp.ne.s32.totalorder %s3595_s5, 1 }
 0x808   : > { %1821 = sbr.rel (%p2374_p4) target bundleno = 2063 (0x80f), region = 120 }
 0x80d   : > { %1822 = vst [vmem:[#allocation18] sm:$0x1] %v1810_v26 }
 0x80e   : > { %1823 = vst [vmem:[#allocation18 + $0x1] sm:$0x1] %v1811_v32 }
 0x80f PF: > { %p2508_p5 = scmp.eq.s32.totalorder %s3174_s21, 1  ;;  %s3596_s7 = sld [smem:[#allocation41_spill]] }
 0x810   : > { %s2994_s14 = smov [#allocation18]   ;;  %s2995_s8 = smov 16  }
 0x811   : > { %s1831_s2 = sshll.u32 %s2994_s14, 4  ;;  %s2996_s1 = smov 1   ;;  %s1832_s2 = int_to_ptr.vmem [resolvable:$true] %s1831_s2 }
 0x815   : > { %s1833_s13 = sshll.u32 %s3596_s7, 4  ;;  %s1834_s13 = int_to_ptr.hbm [resolvable:$true] %s1833_s13 }
 0x816   : > { %2473 = dma.vmem_to_hbm [thread:$0]  (%p2508_p5), %s1832_s2, 32, %s1834_s13, [#allocation5], %s2995_s8, %s2995_s8, %s2996_s1  }
 0x817   : > { %2958 = dma.done.wait (%p2508_p5), [#allocation5], 32  }
 0x818   : > { %2960 = vsyncadd (%p2508_p5), [#allocation5], 4294967264 }
 0x819 PF: > { %s37_s30 = sadd.s32 1, %s2983_s30   ;;  %s3597_s4 = sld [smem:[#allocation25_spill]] }
 0x81a   : > { %p34_p6 = scmp.ge.s32.totalorder %s37_s30, 4   ;;  %s3598_s27 = sld [smem:[#allocation28_spill]] }
 0x81b   : > { %s3599_s21 = sld [smem:[#allocation27_spill]]  ;;  %s3600_s25 = smov %s2967_s26 }
 0x81c   : > { %s3602_s28 = smov %s2979_s29 }
 0x81d   :  { %36 = sbr.rel (!%p34_p6) target bundleno = 26 (0x1a), region = 223 }
 0x81f   : > { %s3601_s26 = smov %s3597_s4 }
 0x821   : > { %s3603_s29 = smov %s3599_s21 }
 0x822   :  { %1850 = vsyncpa [#allocation4], 1 }
 0x823   :  { %1852 = vsyncpa [#allocation4 + $0x1], 1 }
 0x824   :  { %1853 = vsyncpa [#allocation7], 1 }
 0x825   :  { %1855 = vsyncpa [#allocation7 + $0x1], 1 }
 0x826   :  { %1856 = vsyncpa [#allocation10], 1 }
 0x827   :  { %1858 = vsyncpa [#allocation10 + $0x1], 1 }
 0x828   :  { %1859 = vsyncpa [#allocation13], 1 }
 0x829   :  { %1861 = vsyncpa [#allocation13 + $0x1], 1 }
 0x82a   :  { %1862 = vsyncpa [#allocation16], 1 }
 0x82b   :  { %1864 = vsyncpa [#allocation16 + $0x1], 1 }
 0x82c   :  { %1865 = vsyncpa [#allocation5], 1 }
 0x82d   :  { %1867 = vsyncpa [#allocation5 + $0x1], 1 }

</bundles_post_ra>
